<compile_context>
chip_gen: v7x
topology: tpu7x:2x2x1
jax: 0.10.0
libtpu: 0.0.40
codegen_flags: <defaults>
</compile_context>

<pallas_src>
import functools
import math

import jax
import jax.numpy as jnp
from jax.experimental import pallas as pl
from jax.experimental.pallas import tpu as pltpu

LANE = 128


def _pad_up(d, m=LANE):
    return ((d + m - 1) // m) * m


def _round_up(d, m):
    return ((d + m - 1) // m) * m


def _gelu_tanh(x):
    # tanh-approximate GELU (EUP slot); max |diff| vs exact erf GELU ~3e-3.
    c = jnp.float32(0.7978845608028654)  # sqrt(2/pi)
    return 0.5 * x * (1.0 + jnp.tanh(c * (x + 0.044715 * x * x * x)))


def _gelu_exact(x):
    # PyTorch nn.GELU() / F.gelu default = exact erf form (reference only).
    return 0.5 * x * (1.0 + jax.lax.erf(x * jnp.float32(0.7071067811865476)))


def _vmem_capacity_bytes():
    """Per-core VMEM capacity (generation aware); conservative fallback."""
    try:
        info = pltpu.get_tpu_info()
        cap = getattr(info, "vmem_capacity_bytes", None)
        if cap:
            return int(cap)
    except Exception:
        pass
    return 64 * 1024 * 1024  # v7x-sized conservative default


# ------------------------------ fused kernel --------------------------------
def fused_gin_kernel(eps_ref, res_ref, adj_ref, x_ref,
                     w1_ref, b1_ref, w2_ref, b2_ref, g_ref, bt_ref,
                     out_ref, x_carry, x_bf, h2_buf,
                     *, n_rows, in_features, p_out, tile_rows, use_bn,
                     num_layers):
    l = pl.program_id(0)          # layer index      (sequential carry)
    t = pl.program_id(1)          # row-tile index   (BN reduction)
    nt = pl.num_programs(1)

    # ---- one-time init: pad x into the VMEM-resident feature carry ---------
    @pl.when((l == 0) & (t == 0))
    def _init_carry():
        x_carry[...] = jnp.zeros_like(x_carry)
        x_carry[0:n_rows, 0:in_features] = x_ref[...]
        x_bf[...] = x_carry[...].astype(jnp.bfloat16)

    row0 = pl.multiple_of(t * tile_rows, tile_rows)
    eps = eps_ref[l]

    # ---- GIN aggregation + MLP for this row tile (MXU bf16 in / f32 acc) ---
    # propagate(edge_index, x, edge_weight) == A[rows, :] @ x  (sum aggregation)
    agg = jnp.dot(adj_ref[...], x_bf[...], preferred_element_type=jnp.float32)
    h = agg + (1.0 + eps) * x_carry[pl.ds(row0, tile_rows), :]
    # mlp = Sequential(Linear, GELU, Linear)
    h1 = jnp.dot(h.astype(jnp.bfloat16), w1_ref[...],
                 preferred_element_type=jnp.float32) + b1_ref[...]
    h1 = _gelu_tanh(h1)
    h2 = jnp.dot(h1.astype(jnp.bfloat16), w2_ref[...],
                 preferred_element_type=jnp.float32) + b2_ref[...]
    h2_buf[pl.ds(row0, tile_rows), :] = h2          # pre-BN layer output

    # ---- layer finalize on the last row tile: BN + GELU (+ residual) -------
    @pl.when(t == nt - 1)
    def _finalize_layer():
        h2_all = h2_buf[...]
        if use_bn:
            # BatchNorm1d training-mode batch stats (biased var), eps=1e-5,
            # shifted two-pass formulation over the VMEM-resident buffer;
            # padded rows masked out, true divisor = n_rows.
            n_pad = h2_all.shape[0]
            rows = jax.lax.broadcasted_iota(jnp.int32, (n_pad, 1), 0)
            valid = rows < n_rows
            inv_n = jnp.float32(1.0 / n_rows)
            mean = jnp.sum(jnp.where(valid, h2_all, 0.0),
                           axis=0, keepdims=True) * inv_n
            cent = jnp.where(valid, h2_all - mean, 0.0)
            var = jnp.sum(cent * cent, axis=0, keepdims=True) * inv_n
            h2_all = ((h2_all - mean) * jax.lax.rsqrt(var + 1e-5)
                      * g_ref[...] + bt_ref[...])
        x_new = _gelu_tanh(h2_all)                  # post-layer F.gelu
        # F.dropout(p=0.0) -> identity; residual gated by a per-layer flag.
        x_new = x_new + res_ref[l] * x_carry[...]
        x_carry[...] = x_new
        x_bf[...] = x_new.astype(jnp.bfloat16)

    # ---- final layer: emit the (VMEM-resident) output block ----------------
    @pl.when((t == nt - 1) & (l == num_layers - 1))
    def _write_output():
        out_ref[...] = x_carry[:, 0:p_out]


# ------------------------------- parameters ---------------------------------
def _init_linear(key, fan_in, fan_out):
    # torch.nn.Linear default: U(-1/sqrt(fan_in), 1/sqrt(fan_in)); stored (in,out)
    kw, kb = jax.random.split(key)
    bound = 1.0 / math.sqrt(fan_in)
    w = jax.random.uniform(kw, (fan_in, fan_out), jnp.float32, -bound, bound)
    b = jax.random.uniform(kb, (1, fan_out), jnp.float32, -bound, bound)
    return w, b


class BaseGINPallas:
    def __init__(self, in_features, num_layers, hidden, out_feature,
                 use_bn, dropout, use_residual, key, tile_rows=None):
        self.use_bn = use_bn
        self.dropout = dropout                 # used with p=0.0 -> identity
        self.use_residual = use_residual
        self.in_features = in_features
        self.num_layers = num_layers
        if tile_rows is not None:
            assert tile_rows % 8 == 0, "tile_rows must be a multiple of 8"
        self.tile_rows = tile_rows

        if num_layers == 0:
            dims = []
        elif num_layers == 1:
            dims = [(in_features, hidden, out_feature)]
        else:
            dims = ([(in_features, hidden, hidden)]
                    + [(hidden, hidden, hidden)] * (num_layers - 2)
                    + [(hidden, hidden, out_feature)])
        self.dims = dims
        self.out_dim = dims[-1][2] if dims else in_features
        if not dims:
            return

        io_dims = {d for (a, _, b) in dims for d in (a, b)}
        self.p_carry = max(_pad_up(d) for d in io_dims)   # feature-carry lanes
        self.p_hid = _pad_up(hidden)
        self.p_out = _pad_up(self.out_dim)

        self.ref_layers = []     # unpadded f32 params (reference semantics)
        w1s, b1s, w2s, b2s, gs, bs = [], [], [], [], [], []
        eps_list, res_list = [], []
        for (d_in, d_hid, d_out) in dims:
            key, k1, k2 = jax.random.split(key, 3)
            w1, b1 = _init_linear(k1, d_in, d_hid)
            w2, b2 = _init_linear(k2, d_hid, d_out)
            eps = jnp.float32(0.0)                       # GINConv eps init = 0
            gamma = jnp.ones((1, d_out), jnp.float32)    # BN weight init
            beta = jnp.zeros((1, d_out), jnp.float32)    # BN bias init
            self.ref_layers.append((eps, w1, b1, w2, b2, gamma, beta))

            # zero-pad into the shared layer-stacked, lane-dense layouts
            w1s.append(jnp.zeros((self.p_carry, self.p_hid), jnp.float32)
                       .at[:d_in, :d_hid].set(w1))
            b1s.append(jnp.zeros((1, self.p_hid), jnp.float32)
                       .at[:, :d_hid].set(b1))
            w2s.append(jnp.zeros((self.p_hid, self.p_carry), jnp.float32)
                       .at[:d_hid, :d_out].set(w2))
            b2s.append(jnp.zeros((1, self.p_carry), jnp.float32)
                       .at[:, :d_out].set(b2))
            gs.append(jnp.zeros((1, self.p_carry), jnp.float32)
                      .at[:, :d_out].set(gamma))   # padded lanes keep gamma=0
            bs.append(jnp.zeros((1, self.p_carry), jnp.float32)
                      .at[:, :d_out].set(beta))
            eps_list.append(eps)
            res_list.append(jnp.float32(
                1.0 if (use_residual and d_in == d_out) else 0.0))

        # MXU operands in bf16; biases / BN affine stay f32.
        self.w1_all = jnp.stack(w1s).astype(jnp.bfloat16)   # (L, P, PH)
        self.b1_all = jnp.stack(b1s)                         # (L, 1, PH)
        self.w2_all = jnp.stack(w2s).astype(jnp.bfloat16)   # (L, PH, P)
        self.b2_all = jnp.stack(b2s)                         # (L, 1, P)
        self.gamma_all = jnp.stack(gs)                       # (L, 1, P)
        self.beta_all = jnp.stack(bs)                        # (L, 1, P)
        self.eps = jnp.stack(eps_list)                       # (L,)
        self.res_flags = jnp.stack(res_list)                 # (L,)

    # ---- generation-aware tiling / VMEM budgeting ---------------------------
    def _auto_tile_rows(self, n):
        if self.tile_rows is not None:
            return self.tile_rows
        cap = _vmem_capacity_bytes()
        n16 = _round_up(n, 16)
        tm = min(256, n16)        # >=256 rows fills the 256-wide MXU (v6e/v7x)
        # keep the double-buffered bf16 adjacency row block under ~1/4 of VMEM
        # (v7x: 64 MiB/core -> smaller tiles than v5e/v6e's 128 MiB)
        while tm > 16 and 2 * tm * n16 * 2 > cap // 4:
            tm //= 2
        return max(16, (tm // 16) * 16)

    def _vmem_limit_bytes(self, n, n_pad, tm):
        p, ph, po = self.p_carry, self.p_hid, self.p_out
        need = (2 * tm * n_pad * 2                         # adj block, 2 buffers
                + 2 * n * self.in_features * 4             # x input
                + 2 * (2 * p * ph * 2 + (ph + 3 * p) * 4)  # one layer's weights x2
                + n_pad * po * 4                           # resident output block
                + n_pad * p * (4 + 2 + 4)                  # f32/bf16 carry + pre-BN
                + 8 * tm * max(p, ph) * 4                  # in-flight temporaries
                + (2 << 20))                               # headroom
        cap = _vmem_capacity_bytes()
        return int(max(16 << 20, min(int(need * 1.4), cap * 9 // 10)))

    def prepare_adjacency(self, adj):
        """One-time per-graph prep: cast the dense adjacency to bf16 and pad
        rows/cols to the row-tile multiple.  The adjacency is static per graph,
        so this O(N^2) cast/pad should not be paid on every forward."""
        n = adj.shape[0]
        tm = self._auto_tile_rows(n)
        n_pad = _round_up(n, tm)
        adj_bf = (jnp.zeros((n_pad, n_pad), jnp.bfloat16)
                  .at[:n, :n].set(adj.astype(jnp.bfloat16)))
        return (adj_bf, n, tm, n_pad)

    # ------------------------------ forward ---------------------------------
    def __call__(self, x, adj):
        if self.num_layers == 0:
            return x
        if isinstance(adj, tuple):
            adj_bf, n, tm, n_pad = adj
        else:
            adj_bf, n, tm, n_pad = self.prepare_adjacency(adj)
        assert x.shape == (n, self.in_features)
        nt = n_pad // tm
        p, ph, po = self.p_carry, self.p_hid, self.p_out
        L = self.num_layers

        kernel = functools.partial(
            fused_gin_kernel, n_rows=n, in_features=self.in_features,
            p_out=po, tile_rows=tm, use_bn=self.use_bn, num_layers=L)

        smem = pl.BlockSpec(memory_space=pltpu.MemorySpace.SMEM)
        in_specs = [
            smem,                                                      # eps (L,)
            smem,                                                      # residual flags (L,)
            pl.BlockSpec((tm, n_pad), lambda l, t: (t, 0)),            # adjacency row block
            pl.BlockSpec((n, self.in_features), lambda l, t: (0, 0)),  # x (loaded once)
            pl.BlockSpec((None, p, ph), lambda l, t: (l, 0, 0)),       # W1 (per-layer stream)
            pl.BlockSpec((None, 1, ph), lambda l, t: (l, 0, 0)),       # b1
            pl.BlockSpec((None, ph, p), lambda l, t: (l, 0, 0)),       # W2
            pl.BlockSpec((None, 1, p), lambda l, t: (l, 0, 0)),        # b2
            pl.BlockSpec((None, 1, p), lambda l, t: (l, 0, 0)),        # gamma
            pl.BlockSpec((None, 1, p), lambda l, t: (l, 0, 0)),        # beta
        ]
        out_specs = pl.BlockSpec((n_pad, po), lambda l, t: (0, 0))     # resident output

        # advisory cost hint for XLA scheduling around the custom call
        flops = L * (2 * n_pad * n_pad * p + 4 * n_pad * p * ph)
        transcendentals = L * n_pad * (ph + p)
        bytes_accessed = (L * n_pad * n_pad * 2
                          + L * (2 * p * ph * 2 + (ph + 3 * p) * 4)
                          + n * self.in_features * 4 + n_pad * po * 4)
        cost = pl.CostEstimate(flops=flops, transcendentals=transcendentals,
                               bytes_accessed=bytes_accessed)

        out = pl.pallas_call(
            kernel,
            grid=(L, nt),
            in_specs=in_specs,
            out_specs=out_specs,
            out_shape=jax.ShapeDtypeStruct((n_pad, po), jnp.float32),
            scratch_shapes=[
                pltpu.VMEM((n_pad, p), jnp.float32),    # x carry (f32)
                pltpu.VMEM((n_pad, p), jnp.bfloat16),   # x carry (bf16 MXU operand)
                pltpu.VMEM((n_pad, p), jnp.float32),    # pre-BN layer output
            ],
            compiler_params=pltpu.CompilerParams(
                # layer axis carries state; row-tile axis is a BN reduction.
                dimension_semantics=("arbitrary", "arbitrary"),
                vmem_limit_bytes=self._vmem_limit_bytes(n, n_pad, tm)),
            cost_estimate=cost,
        )(self.eps, self.res_flags, adj_bf, x,
          self.w1_all, self.b1_all, self.w2_all, self.b2_all,
          self.gamma_all, self.beta_all)

        return out[:n, :self.out_dim]


# ----- pure-JAX reference (original f32 / exact-GELU semantics) --------------
def _reference(x, adj, layers, use_bn, use_residual):
    for (eps, w1, b1, w2, b2, gamma, beta) in layers:
        agg = adj @ x
        h = (1.0 + eps) * x + agg
        h1 = _gelu_exact(h @ w1 + b1)
        h2 = h1 @ w2 + b2
        if use_bn:
            mean = jnp.mean(h2, axis=0, keepdims=True)
            var = jnp.mean((h2 - mean) ** 2, axis=0, keepdims=True)
            h2 = (h2 - mean) * jax.lax.rsqrt(var + 1e-5) * gamma + beta
        x_new = _gelu_exact(h2)
        x = x + x_new if (use_residual and x.shape == x_new.shape) else x_new
    return x


if __name__ == "__main__":
    key = jax.random.PRNGKey(0)
    N, E = 64, 256
    in_features, hidden, out_feature, num_layers = 32, 64, 32, 2

    k_x, k_src, k_dst, k_w, k_params = jax.random.split(key, 5)
    x = jax.random.normal(k_x, (N, in_features), jnp.float32)
    src = jax.random.randint(k_src, (E,), 0, N)
    dst = jax.random.randint(k_dst, (E,), 0, N)
    edge_weight = jax.random.uniform(k_w, (E,), jnp.float32, 0.1, 1.0)

    # dense adjacency: A[dst, src] = sum of edge_weight (== PyG scatter-add)
    adj = jnp.zeros((N, N), jnp.float32).at[dst, src].add(edge_weight)

    # tile_rows=32 forces a 2-tile row grid at this demo size so the streamed
    # adjacency + cross-tile BN path is exercised; production uses the
    # generation-aware auto tile (targets 256 rows).
    model = BaseGINPallas(in_features, num_layers, hidden, out_feature,
                          use_bn=True, dropout=0.0, use_residual=False,
                          key=k_params, tile_rows=32)

    adj_prep = model.prepare_adjacency(adj)      # one-time O(N^2) cast/pad
    out = jax.block_until_ready(model(x, adj_prep))

    ref = _reference(x, adj, model.ref_layers, use_bn=True, use_residual=False)
    assert out.shape == (N, out_feature)
    # kernel uses bf16 MXU inputs + tanh GELU vs f32/erf reference
    assert jnp.allclose(out, ref, atol=5e-2, rtol=5e-2), (
        "mismatch vs reference, max abs diff = "
        f"{float(jnp.max(jnp.abs(out - ref)))}")
    print("KERNEL_OK")
</pallas_src>

<mosaic_0001>
module attributes {stable_mosaic.version = 11 : i64} {
  func.func @fused_gin_kernel(%arg0: i32, %arg1: i32, %arg2: memref<2xf32, #tpu.memory_space<smem>>, %arg3: memref<2xf32, #tpu.memory_space<smem>>, %arg4: memref<32x64xbf16, #tpu.memory_space<vmem>>, %arg5: memref<64x32xf32, #tpu.memory_space<vmem>>, %arg6: memref<1x128x128xbf16, #tpu.memory_space<vmem>>, %arg7: memref<1x1x128xf32, #tpu.memory_space<vmem>>, %arg8: memref<1x128x128xbf16, #tpu.memory_space<vmem>>, %arg9: memref<1x1x128xf32, #tpu.memory_space<vmem>>, %arg10: memref<1x1x128xf32, #tpu.memory_space<vmem>>, %arg11: memref<1x1x128xf32, #tpu.memory_space<vmem>>, %arg12: memref<64x128xf32, #tpu.memory_space<vmem>>, %arg13: memref<64x128xf32, #tpu.memory_space<vmem>>, %arg14: memref<64x128xbf16, #tpu.memory_space<vmem>>, %arg15: memref<64x128xf32, #tpu.memory_space<vmem>>) attributes {dimension_semantics = [#tpu.dimension_semantics<arbitrary>, #tpu.dimension_semantics<arbitrary>], iteration_bounds = array<i64: 2, 2>, scalar_prefetch = 0 : i64, scratch_operands = 3 : i64, tpu.core_type = #tpu.core_type<tc>, window_params = [{transform_indices = @transform_0, window_bounds = array<i64: 2>}, {transform_indices = @transform_1, window_bounds = array<i64: 2>}, {transform_indices = @transform_2, window_bounds = array<i64: 32, 64>}, {pipeline_mode = #tpu.pipeline_mode<synchronous>, transform_indices = @transform_3, window_bounds = array<i64: 64, 32>}, {transform_indices = @transform_4, window_bounds = array<i64: 1, 128, 128>}, {transform_indices = @transform_5, window_bounds = array<i64: 1, 1, 128>}, {transform_indices = @transform_6, window_bounds = array<i64: 1, 128, 128>}, {transform_indices = @transform_7, window_bounds = array<i64: 1, 1, 128>}, {transform_indices = @transform_8, window_bounds = array<i64: 1, 1, 128>}, {transform_indices = @transform_9, window_bounds = array<i64: 1, 1, 128>}, {pipeline_mode = #tpu.pipeline_mode<synchronous>, transform_indices = @transform_10, window_bounds = array<i64: 64, 128>}]} {
    %c0_i32 = arith.constant 0 : i32
    %0 = arith.cmpi eq, %arg0, %c0_i32 : i32
    %c0_i32_0 = arith.constant 0 : i32
    %1 = arith.cmpi eq, %arg1, %c0_i32_0 : i32
    %2 = arith.andi %0, %1 : i1
    %3 = arith.extui %2 : i1 to i32
    %c0_i32_1 = arith.constant 0 : i32
    %4 = arith.cmpi ne, %3, %c0_i32_1 : i32
    scf.if %4 {
      %cst_30 = arith.constant 0.000000e+00 : f32
      %57 = vector.broadcast %cst_30 : f32 to vector<64x128xf32>
      %c0_31 = arith.constant 0 : index
      %c0_32 = arith.constant 0 : index
      %58 = vector.load %arg13[%c0_31, %c0_32] : memref<64x128xf32, #tpu.memory_space<vmem>>, vector<64x128xf32>
      tpu.vector_store %arg13[%c0_31, %c0_32], %57 {strides = array<i32>} : memref<64x128xf32, #tpu.memory_space<vmem>>, vector<64x128xf32>,
      %c0_33 = arith.constant 0 : index
      %c0_34 = arith.constant 0 : index
      %59 = vector.load %arg5[%c0_33, %c0_34] : memref<64x32xf32, #tpu.memory_space<vmem>>, vector<64x32xf32>
      %c0_35 = arith.constant 0 : index
      %c0_36 = arith.constant 0 : index
      %60 = vector.load %arg13[%c0_35, %c0_36] : memref<64x128xf32, #tpu.memory_space<vmem>>, vector<64x32xf32>
      tpu.vector_store %arg13[%c0_35, %c0_36], %59 {strides = array<i32>} : memref<64x128xf32, #tpu.memory_space<vmem>>, vector<64x32xf32>,
      %c0_37 = arith.constant 0 : index
      %c0_38 = arith.constant 0 : index
      %61 = vector.load %arg13[%c0_37, %c0_38] : memref<64x128xf32, #tpu.memory_space<vmem>>, vector<64x128xf32>
      %62 = arith.truncf %61 : vector<64x128xf32> to vector<64x128xbf16>
      %c0_39 = arith.constant 0 : index
      %c0_40 = arith.constant 0 : index
      %63 = vector.load %arg14[%c0_39, %c0_40] : memref<64x128xbf16, #tpu.memory_space<vmem>>, vector<64x128xbf16>
      tpu.vector_store %arg14[%c0_39, %c0_40], %62 {strides = array<i32>} : memref<64x128xbf16, #tpu.memory_space<vmem>>, vector<64x128xbf16>,
    } else {
    }
    %c32_i32 = arith.constant 32 : i32
    %5 = arith.muli %arg1, %c32_i32 : i32
    %6 = tpu.assume_multiple %5, 32 : i32
    %7 = arith.index_cast %arg0 : i32 to index
    %8 = memref.load %arg2[%7] : memref<2xf32, #tpu.memory_space<smem>>
    %c0 = arith.constant 0 : index
    %c0_2 = arith.constant 0 : index
    %9 = vector.load %arg4[%c0, %c0_2] : memref<32x64xbf16, #tpu.memory_space<vmem>>, vector<32x64xbf16>
    %c0_3 = arith.constant 0 : index
    %c0_4 = arith.constant 0 : index
    %10 = vector.load %arg14[%c0_3, %c0_4] : memref<64x128xbf16, #tpu.memory_space<vmem>>, vector<64x128xbf16>
    %cst = arith.constant dense<0.000000e+00> : vector<32x128xf32>
    %11 = tpu.matmul %9, %10, %cst {dimension_numbers = #tpu.dot_dimension_numbers<[1], [0], [0], [1], [0, 0, 1, 1], [], []>} : vector<32x64xbf16>, vector<64x128xbf16>, vector<32x128xf32> -> vector<32x128xf32>
    %cst_5 = arith.constant 1.000000e+00 : f32
    %12 = arith.addf %cst_5, %8 : f32
    %13 = arith.index_cast %6 : i32 to index
    %c0_6 = arith.constant 0 : index
    %14 = vector.load %arg13[%13, %c0_6] : memref<64x128xf32, #tpu.memory_space<vmem>>, vector<32x128xf32>
    %15 = vector.broadcast %12 : f32 to vector<32x128xf32>
    %16 = arith.mulf %15, %14 : vector<32x128xf32>
    %17 = arith.addf %11, %16 : vector<32x128xf32>
    %18 = arith.truncf %17 : vector<32x128xf32> to vector<32x128xbf16>
    %c0_7 = arith.constant 0 : index
    %c0_8 = arith.constant 0 : index
    %c0_9 = arith.constant 0 : index
    %19 = vector.load %arg6[%c0_7, %c0_8, %c0_9] : memref<1x128x128xbf16, #tpu.memory_space<vmem>>, vector<1x128x128xbf16>
    %20 = vector.shape_cast %19 : vector<1x128x128xbf16> to vector<128x128xbf16>
    %cst_10 = arith.constant dense<0.000000e+00> : vector<32x128xf32>
    %21 = tpu.matmul %18, %20, %cst_10 {dimension_numbers = #tpu.dot_dimension_numbers<[1], [0], [0], [1], [0, 0, 1, 1], [], []>} : vector<32x128xbf16>, vector<128x128xbf16>, vector<32x128xf32> -> vector<32x128xf32>
    %c0_11 = arith.constant 0 : index
    %c0_12 = arith.constant 0 : index
    %c0_13 = arith.constant 0 : index
    %22 = vector.load %arg7[%c0_11, %c0_12, %c0_13] : memref<1x1x128xf32, #tpu.memory_space<vmem>>, vector<1x1x128xf32>
    %23 = vector.shape_cast %22 : vector<1x1x128xf32> to vector<1x128xf32>
    %24 = vector.broadcast %23 : vector<1x128xf32> to vector<32x128xf32>
    %25 = arith.addf %21, %24 : vector<32x128xf32>
    %cst_14 = arith.constant 5.000000e-01 : f32
    %26 = vector.broadcast %cst_14 : f32 to vector<32x128xf32>
    %27 = arith.mulf %26, %25 : vector<32x128xf32>
    %cst_15 = arith.constant 4.471500e-02 : f32
    %28 = vector.broadcast %cst_15 : f32 to vector<32x128xf32>
    %29 = arith.mulf %28, %25 : vector<32x128xf32>
    %30 = arith.mulf %29, %25 : vector<32x128xf32>
    %31 = arith.mulf %30, %25 : vector<32x128xf32>
    %32 = arith.addf %25, %31 : vector<32x128xf32>
    %cst_16 = arith.constant 0.797884583 : f32
    %33 = vector.broadcast %cst_16 : f32 to vector<32x128xf32>
    %34 = arith.mulf %33, %32 : vector<32x128xf32>
    %35 = math.tanh %34 : vector<32x128xf32>
    %cst_17 = arith.constant 1.000000e+00 : f32
    %36 = vector.broadcast %cst_17 : f32 to vector<32x128xf32>
    %37 = arith.addf %36, %35 : vector<32x128xf32>
    %38 = arith.mulf %27, %37 : vector<32x128xf32>
    %39 = arith.truncf %38 : vector<32x128xf32> to vector<32x128xbf16>
    %c0_18 = arith.constant 0 : index
    %c0_19 = arith.constant 0 : index
    %c0_20 = arith.constant 0 : index
    %40 = vector.load %arg8[%c0_18, %c0_19, %c0_20] : memref<1x128x128xbf16, #tpu.memory_space<vmem>>, vector<1x128x128xbf16>
    %41 = vector.shape_cast %40 : vector<1x128x128xbf16> to vector<128x128xbf16>
    %cst_21 = arith.constant dense<0.000000e+00> : vector<32x128xf32>
    %42 = tpu.matmul %39, %41, %cst_21 {dimension_numbers = #tpu.dot_dimension_numbers<[1], [0], [0], [1], [0, 0, 1, 1], [], []>} : vector<32x128xbf16>, vector<128x128xbf16>, vector<32x128xf32> -> vector<32x128xf32>
    %c0_22 = arith.constant 0 : index
    %c0_23 = arith.constant 0 : index
    %c0_24 = arith.constant 0 : index
    %43 = vector.load %arg9[%c0_22, %c0_23, %c0_24] : memref<1x1x128xf32, #tpu.memory_space<vmem>>, vector<1x1x128xf32>
    %44 = vector.shape_cast %43 : vector<1x1x128xf32> to vector<1x128xf32>
    %45 = vector.broadcast %44 : vector<1x128xf32> to vector<32x128xf32>
    %46 = arith.addf %42, %45 : vector<32x128xf32>
    %47 = arith.index_cast %6 : i32 to index
    %c0_25 = arith.constant 0 : index
    %48 = vector.load %arg15[%47, %c0_25] : memref<64x128xf32, #tpu.memory_space<vmem>>, vector<32x128xf32>
    tpu.vector_store %arg15[%47, %c0_25], %46 {strides = array<i32>} : memref<64x128xf32, #tpu.memory_space<vmem>>, vector<32x128xf32>,
    %c1_i32 = arith.constant 1 : i32
    %49 = arith.cmpi eq, %arg1, %c1_i32 : i32
    %50 = arith.extui %49 : i1 to i32
    %c0_i32_26 = arith.constant 0 : i32
    %51 = arith.cmpi ne, %50, %c0_i32_26 : i32
    scf.if %51 {
      %c0_30 = arith.constant 0 : index
      %c0_31 = arith.constant 0 : index
      %57 = vector.load %arg15[%c0_30, %c0_31] : memref<64x128xf32, #tpu.memory_space<vmem>>, vector<64x128xf32>
      %58 = tpu.iota {dimensions = array<i32: 0>} : vector<64x1xi32>
      %c64_i32 = arith.constant 64 : i32
      %59 = vector.broadcast %c64_i32 : i32 to vector<64x1xi32>
      %60 = arith.cmpi slt, %58, %59 : vector<64x1xi32>
      %cst_32 = arith.constant 0.000000e+00 : f32
      %61 = vector.shape_cast %60 : vector<64x1xi1> to vector<64x1xi1>
      %62 = vector.broadcast %61 : vector<64x1xi1> to vector<64x128xi1>
      %63 = vector.broadcast %cst_32 : f32 to vector<64x128xf32>
      %64 = arith.select %62, %57, %63 : vector<64x128xi1>, vector<64x128xf32>
      %cst_33 = arith.constant dense<0.000000e+00> : vector<128xf32>
      %65 = vector.multi_reduction <add>, %64, %cst_33 [0] : vector<64x128xf32> to vector<128xf32>
      %66 = vector.shape_cast %65 : vector<128xf32> to vector<1x128xf32>
      %cst_34 = arith.constant 1.562500e-02 : f32
      %67 = vector.broadcast %cst_34 : f32 to vector<1x128xf32>
      %68 = arith.mulf %66, %67 : vector<1x128xf32>
      %69 = vector.broadcast %68 : vector<1x128xf32> to vector<64x128xf32>
      %70 = arith.subf %57, %69 : vector<64x128xf32>
      %cst_35 = arith.constant 0.000000e+00 : f32
      %71 = vector.shape_cast %60 : vector<64x1xi1> to vector<64x1xi1>
      %72 = vector.broadcast %71 : vector<64x1xi1> to vector<64x128xi1>
      %73 = vector.broadcast %cst_35 : f32 to vector<64x128xf32>
      %74 = arith.select %72, %70, %73 : vector<64x128xi1>, vector<64x128xf32>
      %75 = arith.mulf %74, %74 : vector<64x128xf32>
      %cst_36 = arith.constant dense<0.000000e+00> : vector<128xf32>
      %76 = vector.multi_reduction <add>, %75, %cst_36 [0] : vector<64x128xf32> to vector<128xf32>
      %77 = vector.shape_cast %76 : vector<128xf32> to vector<1x128xf32>
      %cst_37 = arith.constant 1.562500e-02 : f32
      %78 = vector.broadcast %cst_37 : f32 to vector<1x128xf32>
      %79 = arith.mulf %77, %78 : vector<1x128xf32>
      %80 = vector.broadcast %68 : vector<1x128xf32> to vector<64x128xf32>
      %81 = arith.subf %57, %80 : vector<64x128xf32>
      %cst_38 = arith.constant 9.99999974E-6 : f32
      %82 = vector.broadcast %cst_38 : f32 to vector<1x128xf32>
      %83 = arith.addf %79, %82 : vector<1x128xf32>
      %84 = math.rsqrt %83 : vector<1x128xf32>
      %85 = vector.broadcast %84 : vector<1x128xf32> to vector<64x128xf32>
      %86 = arith.mulf %81, %85 : vector<64x128xf32>
      %c0_39 = arith.constant 0 : index
      %c0_40 = arith.constant 0 : index
      %c0_41 = arith.constant 0 : index
      %87 = vector.load %arg10[%c0_39, %c0_40, %c0_41] : memref<1x1x128xf32, #tpu.memory_space<vmem>>, vector<1x1x128xf32>
      %88 = vector.shape_cast %87 : vector<1x1x128xf32> to vector<1x128xf32>
      %89 = vector.broadcast %88 : vector<1x128xf32> to vector<64x128xf32>
      %90 = arith.mulf %86, %89 : vector<64x128xf32>
      %c0_42 = arith.constant 0 : index
      %c0_43 = arith.constant 0 : index
      %c0_44 = arith.constant 0 : index
      %91 = vector.load %arg11[%c0_42, %c0_43, %c0_44] : memref<1x1x128xf32, #tpu.memory_space<vmem>>, vector<1x1x128xf32>
      %92 = vector.shape_cast %91 : vector<1x1x128xf32> to vector<1x128xf32>
      %93 = vector.broadcast %92 : vector<1x128xf32> to vector<64x128xf32>
      %94 = arith.addf %90, %93 : vector<64x128xf32>
      %cst_45 = arith.constant 5.000000e-01 : f32
      %95 = vector.broadcast %cst_45 : f32 to vector<64x128xf32>
      %96 = arith.mulf %95, %94 : vector<64x128xf32>
      %cst_46 = arith.constant 4.471500e-02 : f32
      %97 = vector.broadcast %cst_46 : f32 to vector<64x128xf32>
      %98 = arith.mulf %97, %94 : vector<64x128xf32>
      %99 = arith.mulf %98, %94 : vector<64x128xf32>
      %100 = arith.mulf %99, %94 : vector<64x128xf32>
      %101 = arith.addf %94, %100 : vector<64x128xf32>
      %cst_47 = arith.constant 0.797884583 : f32
      %102 = vector.broadcast %cst_47 : f32 to vector<64x128xf32>
      %103 = arith.mulf %102, %101 : vector<64x128xf32>
      %104 = math.tanh %103 : vector<64x128xf32>
      %cst_48 = arith.constant 1.000000e+00 : f32
      %105 = vector.broadcast %cst_48 : f32 to vector<64x128xf32>
      %106 = arith.addf %105, %104 : vector<64x128xf32>
      %107 = arith.mulf %96, %106 : vector<64x128xf32>
      %108 = arith.index_cast %arg0 : i32 to index
      %109 = memref.load %arg3[%108] : memref<2xf32, #tpu.memory_space<smem>>
      %c0_49 = arith.constant 0 : index
      %c0_50 = arith.constant 0 : index
      %110 = vector.load %arg13[%c0_49, %c0_50] : memref<64x128xf32, #tpu.memory_space<vmem>>, vector<64x128xf32>
      %111 = vector.broadcast %109 : f32 to vector<64x128xf32>
      %112 = arith.mulf %111, %110 : vector<64x128xf32>
      %113 = arith.addf %107, %112 : vector<64x128xf32>
      %c0_51 = arith.constant 0 : index
      %c0_52 = arith.constant 0 : index
      %114 = vector.load %arg13[%c0_51, %c0_52] : memref<64x128xf32, #tpu.memory_space<vmem>>, vector<64x128xf32>
      tpu.vector_store %arg13[%c0_51, %c0_52], %113 {strides = array<i32>} : memref<64x128xf32, #tpu.memory_space<vmem>>, vector<64x128xf32>,
      %115 = arith.truncf %113 : vector<64x128xf32> to vector<64x128xbf16>
      %c0_53 = arith.constant 0 : index
      %c0_54 = arith.constant 0 : index
      %116 = vector.load %arg14[%c0_53, %c0_54] : memref<64x128xbf16, #tpu.memory_space<vmem>>, vector<64x128xbf16>
      tpu.vector_store %arg14[%c0_53, %c0_54], %115 {strides = array<i32>} : memref<64x128xbf16, #tpu.memory_space<vmem>>, vector<64x128xbf16>,
    } else {
    }
    %c1_i32_27 = arith.constant 1 : i32
    %52 = arith.cmpi eq, %arg1, %c1_i32_27 : i32
    %c1_i32_28 = arith.constant 1 : i32
    %53 = arith.cmpi eq, %arg0, %c1_i32_28 : i32
    %54 = arith.andi %52, %53 : i1
    %55 = arith.extui %54 : i1 to i32
    %c0_i32_29 = arith.constant 0 : i32
    %56 = arith.cmpi ne, %55, %c0_i32_29 : i32
    scf.if %56 {
      %c0_30 = arith.constant 0 : index
      %c0_31 = arith.constant 0 : index
      %57 = vector.load %arg13[%c0_30, %c0_31] : memref<64x128xf32, #tpu.memory_space<vmem>>, vector<64x128xf32>
      %c0_32 = arith.constant 0 : index
      %c0_33 = arith.constant 0 : index
      %58 = vector.load %arg12[%c0_32, %c0_33] : memref<64x128xf32, #tpu.memory_space<vmem>>, vector<64x128xf32>
      tpu.vector_store %arg12[%c0_32, %c0_33], %57 {strides = array<i32>} : memref<64x128xf32, #tpu.memory_space<vmem>>, vector<64x128xf32>,
    } else {
    }
    return
  }
  func.func @transform_0(%arg0: i32, %arg1: i32) -> i32 {
    %c0_i32 = arith.constant 0 : i32
    %c0_i32_0 = arith.constant 0 : i32
    return %c0_i32 : i32
  }
  func.func @transform_1(%arg0: i32, %arg1: i32) -> i32 {
    %c0_i32 = arith.constant 0 : i32
    %c0_i32_0 = arith.constant 0 : i32
    return %c0_i32 : i32
  }
  func.func @transform_2(%arg0: i32, %arg1: i32) -> (i32, i32) {
    %c0_i32 = arith.constant 0 : i32
    %c0_i32_0 = arith.constant 0 : i32
    return %arg1, %c0_i32 : i32, i32
  }
  func.func @transform_3(%arg0: i32, %arg1: i32) -> (i32, i32) {
    %c0_i32 = arith.constant 0 : i32
    %c0_i32_0 = arith.constant 0 : i32
    %c0_i32_1 = arith.constant 0 : i32
    return %c0_i32, %c0_i32_0 : i32, i32
  }
  func.func @transform_4(%arg0: i32, %arg1: i32) -> (i32, i32, i32) {
    %c0_i32 = arith.constant 0 : i32
    %c0_i32_0 = arith.constant 0 : i32
    %c0_i32_1 = arith.constant 0 : i32
    return %arg0, %c0_i32, %c0_i32_0 : i32, i32, i32
  }
  func.func @transform_5(%arg0: i32, %arg1: i32) -> (i32, i32, i32) {
    %c0_i32 = arith.constant 0 : i32
    %c0_i32_0 = arith.constant 0 : i32
    %c0_i32_1 = arith.constant 0 : i32
    return %arg0, %c0_i32, %c0_i32_0 : i32, i32, i32
  }
  func.func @transform_6(%arg0: i32, %arg1: i32) -> (i32, i32, i32) {
    %c0_i32 = arith.constant 0 : i32
    %c0_i32_0 = arith.constant 0 : i32
    %c0_i32_1 = arith.constant 0 : i32
    return %arg0, %c0_i32, %c0_i32_0 : i32, i32, i32
  }
  func.func @transform_7(%arg0: i32, %arg1: i32) -> (i32, i32, i32) {
    %c0_i32 = arith.constant 0 : i32
    %c0_i32_0 = arith.constant 0 : i32
    %c0_i32_1 = arith.constant 0 : i32
    return %arg0, %c0_i32, %c0_i32_0 : i32, i32, i32
  }
  func.func @transform_8(%arg0: i32, %arg1: i32) -> (i32, i32, i32) {
    %c0_i32 = arith.constant 0 : i32
    %c0_i32_0 = arith.constant 0 : i32
    %c0_i32_1 = arith.constant 0 : i32
    return %arg0, %c0_i32, %c0_i32_0 : i32, i32, i32
  }
  func.func @transform_9(%arg0: i32, %arg1: i32) -> (i32, i32, i32) {
    %c0_i32 = arith.constant 0 : i32
    %c0_i32_0 = arith.constant 0 : i32
    %c0_i32_1 = arith.constant 0 : i32
    return %arg0, %c0_i32, %c0_i32_0 : i32, i32, i32
  }
  func.func @transform_10(%arg0: i32, %arg1: i32) -> (i32, i32) {
    %c0_i32 = arith.constant 0 : i32
    %c0_i32_0 = arith.constant 0 : i32
    %c0_i32_1 = arith.constant 0 : i32
    return %c0_i32, %c0_i32_0 : i32, i32
  }
}

</mosaic_0001>

<bundles_post_ra>
// kernel: tpu_custom_call.1
= control target key start
LH: loop header
LB: loop body
LE: loop exit
PB: predicated region body
PF: predicated region fallthrough
CT: control target
= control target key end

     0   :  { %s2367_s0 = inlined_call_operand.vmem [shape: f32[2], index: 0, kind: input, shape index: {}]   ;;  %s2368_s1 = inlined_call_operand.vmem [shape: f32[2], index: 1, kind: input, shape index: {}]   ;;  %s2369_s2 = inlined_call_operand.vmem [shape: bf16[64,64], index: 2, kind: input, shape index: {}]   ;;  %s2370_s3 = inlined_call_operand.vmem [shape: f32[64,32], index: 3, kind: input, shape index: {}]   ;;  %s2371_s4 = inlined_call_operand.hbm [shape: bf16[2,128,128], index: 4, kind: input, shape index: {}]   ;;  %s2372_s5 = inlined_call_operand.vmem [shape: f32[2,1,128], index: 5, kind: input, shape index: {}]   ;;  %s2373_s6 = inlined_call_operand.hbm [shape: bf16[2,128,128], index: 6, kind: input, shape index: {}]   ;;  %s2374_s7 = inlined_call_operand.vmem [shape: f32[2,1,128], index: 7, kind: input, shape index: {}]   ;;  %s2375_s8 = inlined_call_operand.vmem [shape: f32[2,1,128], index: 8, kind: input, shape index: {}]   ;;  %s2376_s9 = inlined_call_operand.vmem [shape: f32[2,1,128], index: 9, kind: input, shape index: {}]   ;;  %s2377_s10 = inlined_call_operand.hbm [shape: f32[64,128], index: 10, kind: output, shape index: {}]  }
   0x1   :  { %2391 = sst [smem:[#allocation24_spill]] %s2367_s0 }
   0x2   :  { %2392 = sst [smem:[#allocation25_spill]] %s2368_s1 }
   0x3   :  { %2393 = sst [smem:[#allocation26_spill]] %s2370_s3 }
   0x4   :  { %2394 = sst [smem:[#allocation27_spill]] %s2371_s4 }
   0x5   :  { %2395 = sst [smem:[#allocation28_spill]] %s2373_s6 }
   0x6   :  { %2396 = sst [smem:[#allocation29_spill]] %s2377_s10 }
   0x7   :  { %15 = vsyncpa [#allocation8], 0 }
   0x8   :  { %16 = vsyncpa [#allocation10], 0 }
   0x9   :  { %17 = vsyncpa [#allocation6], 0 }
   0xa   :  { %19 = vsyncpa [#allocation6 + $0x1], 0 }
   0xb   :  { %20 = vsyncpa [#allocation13], 0 }
   0xc   :  { %22 = vsyncpa [#allocation13 + $0x1], 0 }
   0xd   :  { %23 = vsyncpa [#allocation7], 0  ;;  %s1937_s13 = smov 0   ;;  %s1939_s14 = smov 0  }
   0xe   :  { %s1941_s15 = smov 0   ;;  %s1943_s16 = smov 0  }
   0xf   :  { %s1945_s17 = smov 0   ;;  %s1947_s18 = smov 0  }
  0x10   :  { %s1949_s19 = smov 0   ;;  %s1951_s20 = smov 0  }
  0x11 LB: > { %2397 = sst [smem:[#allocation20_spill]] %s1862_s18  ;;  %s2383_s21 = sadd.s32 4294967295, %s1870_s20   ;;  %s1870_s20 = sphi %s1951_s20, %s29_s20   ;;  %s1866_s19 = sphi %s1949_s19, %s2431_s19   ;;  %s1862_s18 = sphi %s1947_s18, %s2425_s18   ;;  %s1858_s17 = sphi %s1945_s17, %s2430_s17   ;;  %s1854_s16 = sphi %s1943_s16, %s2424_s16   ;;  %s1850_s15 = sphi %s1941_s15, %s2429_s15   ;;  %s1846_s14 = sphi %s1939_s14, %s2428_s14   ;;  %s1842_s13 = sphi %s1937_s13, %s2427_s13  }
  0x12   : > { %2398 = sst [smem:[#allocation21_spill]] %s1870_s20  ;;  %p144_p0 = scmp.ne.s32.totalorder %s1850_s15, %s1846_s14 }
  0x13   : > { %p145_p1 = scmp.eq.s32.totalorder %s1870_s20, 0  ;;  %p150_p2 = scmp.ne.s32.totalorder %s1846_s14, %s1842_s13 }
  0x14   : > { %p1983_p3 = scmp.eq.s32.totalorder %s2383_s21, 0  ;;  %p1392_p5 = scmp.ge.s32.totalorder %s1870_s20, 1 }
  0x15   : > { %p146_p4 = por %p145_p1, %p144_p0  ;;  %p312_p7 = scmp.lt.s32.totalorder %s1870_s20, 5 }
  0x16   : > { %s2399_s23 = scalar_select %p1983_p3, 1, 0 }
  0x17   : > { %p1990_p6 = por %p1983_p3, %p150_p2  ;;  %s2401_s0 = sld [smem:[#allocation24_spill]] }
  0x18   : > { %p1998_p8 = pnand %p1392_p5, %p312_p7  ;;  %p1551_p10 = scmp.lt.s32.totalorder %s1870_s20, 4 }
  0x19   : > { %s2400_s24 = scalar_select %p1990_p6, 1, 0 }
  0x1a   : > { %s2402_s28 = scalar_select %p1998_p8, 1, 0 }
  0x1b   : > { %p1535_p9 = pneg %p1998_p8  ;;  %s2403_s1 = sld [smem:[#allocation25_spill]] }
  0x1c   : > { %p2014_p12 = pnand %p1551_p10, %p146_p4 }
  0x1d   : > { %s325_s27 = sshll.u32 %s2401_s0, 4  ;;  %p2010_p11 = pnand %p1535_p9, %p1983_p3  ;;  %s326_s27 = int_to_ptr.vmem [resolvable:$true] %s325_s27 }
  0x1e   : > { %s2405_s13 = scalar_select %p2014_p12, 1, 0 }
  0x1f   : > { %s1672_s25 = scalar_lea.vmem %s326_s27, 16  ;;  %p1674_p0 = pneg %p2010_p11 }
  0x20   : > { %p1673_p13 = scmp.ne.s32.totalorder %s326_s27, %s1672_s25  ;;  %p1680_p5 = scmp.lt.s32.totalorder %s326_s27, %s326_s27 }
  0x21   : > { %s336_s11 = sshll.u32 %s2403_s1, 4  ;;  %p1681_p7 = scmp.lt.s32.totalorder %s1672_s25, %s1672_s25  ;;  %s337_s11 = int_to_ptr.vmem [resolvable:$true] %s336_s11 }
  0x22   : > { %p1675_p1 = pnand %p1674_p0, %p1673_p13 }
  0x23   : > { %p1682_p6 = por %p1681_p7, %p1680_p5 }
  0x24   : > { %p1676_p2 = pneg %p1675_p1 }
  0x26   : > { %p1683_p8 = pnand %p1682_p6, %p1676_p2 }
  0x28   : > { %1686 = shalt.err (!%p1683_p8)
}
  0x29   : > { %s1872_s26 = smov [#allocation5]   ;;  %s1687_s29 = scalar_lea.vmem %s337_s11, 16 }
  0x2a   : > { %1538 = dma.vmem_to_smem (!%p2010_p11), %s326_s27, 16, %s1872_s26, [#allocation8]  }
  0x2b   : > { %p1688_p4 = scmp.ne.s32.totalorder %s337_s11, %s1687_s29  ;;  %p1695_p3 = scmp.lt.s32.totalorder %s337_s11, %s337_s11 }
  0x2c   : > { %p1696_p12 = scmp.lt.s32.totalorder %s1687_s29, %s1687_s29 }
  0x2d   : > { %p1690_p9 = pnand %p1688_p4, %p1674_p0 }
  0x2e   : > { %p1697_p13 = por %p1696_p12, %p1695_p3 }
  0x2f   : > { %p1691_p10 = pneg %p1690_p9 }
  0x31   : > { %p1698_p1 = pnand %p1697_p13, %p1691_p10 }
  0x33   : > { %1701 = shalt.err (!%p1698_p1)
}
  0x34   : > { %s1873_s30 = smov [#allocation9]   ;;  %s38_s27 = sadd.s32 1, %s1862_s18 }
  0x35   : > { %1541 = dma.vmem_to_smem (!%p2010_p11), %s337_s11, 16, %s1873_s30, [#allocation10]  }
  0x36   : > { %p39_p6 = scmp.ge.s32.totalorder %s38_s27, 2  ;;  %s41_s25 = sadd.s32 1, %s1866_s19 }
  0x37   : > { %s2027_s26 = sand.u32 1, %s1850_s15   ;;  %s2385_s29 = sshll.u32 %s1866_s19, 10 }
  0x38   : > { %s2433_s27 = smov (%p39_p6, %s38_s27), 0  ;;  %s2435_s25 = smov (!%p39_p6, %s41_s25), %s1866_s19 }
  0x39   : > { %2406 = sst [smem:[#allocation22_spill]] %s2433_s27  ;;  %s2384_s12 = sshll.u32 %s2027_s26, 6 }
  0x3a   : > { %p43_p3 = scmp.ge.s32.totalorder %s2435_s25, 2  ;;  %s2407_s4 = sld [smem:[#allocation27_spill]] }
  0x3b   : > { %s363_s30 = scalar_lea.vmem [#allocation11], %s2384_s12  ;;  %s360_s21 = scalar_lea.sflag [#allocation6], %s2027_s26 }
  0x3c   : > { %s370_s0 = sshll.u32 %s363_s30, 4  ;;  %s2437_s25 = smov (%p43_p3, %s2435_s25), 0  ;;  %s2045_s0 = int_to_ptr.vmem [resolvable:$true] %s370_s0 }
  0x3d   : > { %2408 = sst [smem:[#allocation23_spill]] %s2437_s25  ;;  %s134_s1 = ssub.s32 %s1866_s19, %s2437_s25 }
  0x3e   : > { %p2049_p8 = scmp.eq.s32.totalorder %s134_s1, 0  ;;  %p2410_p12 = scmp.ne.s32.totalorder %s2405_s13, 0 }
  0x40   : > { %s2039_s11 = scalar_lea.hbm %s2407_s4, %s2385_s29  ;;  %p1704_p0 = pneg %p2410_p12 }
  0x41   : > { %s1702_s22 = scalar_lea.hbm %s2039_s11, 1024  ;;  %s1707_s29 = scalar_lea.hbm %s2407_s4, 2048 }
  0x42   : > { %p1703_p11 = scmp.ne.s32.totalorder %s2039_s11, %s1702_s22  ;;  %p1708_p7 = scmp.lt.u32.totalorder %s2039_s11, %s2407_s4 }
  0x43   : > { %p1709_p4 = scmp.lt.u32.totalorder %s1707_s29, %s1702_s22  ;;  %p1711_p10 = scmp.lt.u32.totalorder %s1702_s22, %s2039_s11 }
  0x44   : > { %p1705_p2 = pnand %p1704_p0, %p1703_p11 }
  0x45   : > { %p1710_p9 = por %p1709_p4, %p1708_p7 }
  0x46   : > { %p1706_p5 = pneg %p1705_p2 }
  0x47   : > { %p1712_p13 = por %p1711_p10, %p1710_p9 }
  0x49   : > { %p1713_p1 = pnand %p1712_p13, %p1706_p5 }
  0x4b   : > { %1716 = shalt.err (!%p1713_p1)
}
  0x4c   : > { %s1717_s1 = scalar_lea.vmem %s2045_s0, 1024  ;;  %s1874_s12 = smov [#allocation11]  }
  0x4d   : > { %p1718_p6 = scmp.ne.s32.totalorder %s2045_s0, %s1717_s1  ;;  %s1722_s30 = sshll.u32 %s1874_s12, 4  ;;  %s1723_s30 = int_to_ptr.vmem [resolvable:$false] %s1722_s30 }
  0x4e   : > { %s1724_s10 = scalar_lea.vmem %s1723_s30, 2048  ;;  %p1725_p2 = scmp.lt.s32.totalorder %s2045_s0, %s1723_s30 }
  0x4f   : > { %p1720_p3 = pnand %p1718_p6, %p1704_p0  ;;  %p1726_p7 = scmp.lt.s32.totalorder %s1724_s10, %s1717_s1 }
  0x51   : > { %p1721_p11 = pneg %p1720_p3  ;;  %p1727_p4 = por %p1726_p7, %p1725_p2 }
  0x53   : > { %p1728_p9 = pnand %p1727_p4, %p1721_p11 }
  0x55   : > { %1731 = shalt.err (!%p1728_p9)
}
  0x56   : > { %s1875_s18 = smov 64   ;;  %s1876_s29 = smov 4  }
  0x57   : > { %1545 = dma.hbm_to_vmem [thread:$0]  (!%p2410_p12), %s2039_s11, 1024, %s2045_s0, %s360_s21, %s1875_s18, %s1875_s18, %s1876_s29  }
  0x58   : > { %s2411_s22 = sadd.s32 1, %s1850_s15  ;;  %s2412_s12 = sshll.u32 %s1866_s19, 10 }
  0x59   : > { %s2089_s1 = scalar_select %p2049_p8, %s1850_s15, %s2411_s22  }
  0x5a   : > { %s2413_s6 = sld [smem:[#allocation28_spill]]  ;;  %s2414_s25 = sshll.u32 %s2027_s26, 6 }
  0x5b   : > { %s390_s20 = scalar_lea.vmem [#allocation12], %s2414_s25  ;;  %s387_s0 = scalar_lea.sflag [#allocation13], %s2027_s26 }
  0x5c   : > { %s397_s3 = sshll.u32 %s390_s20, 4  ;;  %s2100_s3 = int_to_ptr.vmem [resolvable:$true] %s397_s3 }
  0x60   : > { %s2096_s4 = scalar_lea.hbm %s2413_s6, %s2412_s12  ;;  %s1737_s22 = scalar_lea.hbm %s2413_s6, 2048 }
  0x61   : > { %s1732_s11 = scalar_lea.hbm %s2096_s4, 1024  ;;  %p1738_p13 = scmp.lt.u32.totalorder %s2096_s4, %s2413_s6 }
  0x62   : > { %p1733_p5 = scmp.ne.s32.totalorder %s2096_s4, %s1732_s11  ;;  %p1739_p1 = scmp.lt.u32.totalorder %s1737_s22, %s1732_s11 }
  0x63   : > { %p1741_p3 = scmp.lt.u32.totalorder %s1732_s11, %s2096_s4 }
  0x64   : > { %p1735_p8 = pnand %p1733_p5, %p1704_p0  ;;  %p1740_p6 = por %p1739_p1, %p1738_p13 }
  0x66   : > { %p1736_p10 = pneg %p1735_p8  ;;  %p1742_p11 = por %p1741_p3, %p1740_p6 }
  0x68   : > { %p1743_p2 = pnand %p1742_p11, %p1736_p10 }
  0x6a   : > { %1746 = shalt.err (!%p1743_p2)
}
  0x6b   : > { %s1747_s20 = scalar_lea.vmem %s2100_s3, 1024  ;;  %s1877_s25 = smov [#allocation12]  }
  0x6c   : > { %p1748_p7 = scmp.ne.s32.totalorder %s2100_s3, %s1747_s20  ;;  %s1752_s10 = sshll.u32 %s1877_s25, 4  ;;  %s1753_s10 = int_to_ptr.vmem [resolvable:$false] %s1752_s10 }
  0x6d   : > { %s1754_s27 = scalar_lea.vmem %s1753_s10, 2048  ;;  %p1755_p5 = scmp.lt.s32.totalorder %s2100_s3, %s1753_s10 }
  0x6e   : > { %p1750_p4 = pnand %p1748_p7, %p1704_p0  ;;  %p1756_p8 = scmp.lt.s32.totalorder %s1754_s27, %s1747_s20 }
  0x70   : > { %p1751_p9 = pneg %p1750_p4  ;;  %p1757_p13 = por %p1756_p8, %p1755_p5 }
  0x72   : > { %p1758_p1 = pnand %p1757_p13, %p1751_p9 }
  0x74   : > { %1761 = shalt.err (!%p1758_p1)
}
  0x75   : > { %1548 = dma.hbm_to_vmem [thread:$0]  (!%p2410_p12), %s2096_s4, 1024, %s2100_s3, %s387_s0, %s1875_s18, %s1875_s18, %s1876_s29  }
  0x76   : > { %p2415_p0 = scmp.ne.s32.totalorder %s2402_s28, 0 }
  0x77   : > { %p2416_p10 = scmp.ne.s32.totalorder (!%p2415_p0), %s2399_s23, 0 }
  0x78   : > { %427 = sbr.rel (%p2415_p0) target bundleno = 1041 (0x411), region = 60 }
  0x7f   : > { %1821 = dma.done.wait (%p2416_p10), [#allocation8], 16  }
  0x80   : > { %1823 = vsyncadd (%p2416_p10), [#allocation8], 4294967280 }
  0x81   : > { %1825 = dma.done.wait (%p2416_p10), [#allocation10], 16  }
  0x82   : > { %1827 = vsyncadd (%p2416_p10), [#allocation10], 4294967280  ;;  %s437_s13 = sand.u32 1, %s1846_s14   ;;  %p2417_p12 = scmp.ne.s32.totalorder %s2400_s24, 0 }
  0x83   : > { %s1405_s26 = sshll.u32 %s437_s13, 6  ;;  %s438_s3 = scalar_lea.sflag [#allocation6], %s437_s13 }
  0x84   : > { %s2142_s4 = scalar_lea.vmem [#allocation11], %s1405_s26 }
  0x85   : > { %1829 = dma.done.wait (%p2417_p12), %s438_s3, 1024  }
  0x86   : > { %1831 = vsyncadd (%p2417_p12), %s438_s3, 4294966272  ;;  %s447_s28 = scalar_lea.sflag [#allocation13], %s437_s13  ;;  %s2148_s18 = scalar_lea.vmem [#allocation12], %s1405_s26 }
  0x87   : > { %1833 = dma.done.wait (%p2417_p12), %s447_s28, 1024  }
  0x88   : > { %1835 = vsyncadd (%p2417_p12), %s447_s28, 4294966272 }
  0x89   : > { %455 = sfence }
  0x8a   : > { %s1407_s23 = sshll.u32 %s1854_s16, 2  ;;  %p511_p6 = scmp.lt.s32.totalorder %s1858_s17, 1 }
  0x8b   : > { %p506_p3 = scmp.lt.s32.totalorder %s1407_s23, 7  ;;  %p524_p11 = scmp.eq.s32.totalorder %s1858_s17, 0 }
  0x8c   : > { %s2158_s29 = scalar_select %p511_p6, %s1858_s17, 1 }
  0x8d   : > { %s2439_s23 = smov (!%p506_p3, %s1407_s23), 7  ;;  %p525_p2 = scmp.eq.s32.totalorder %s1854_s16, 0 }
  0x8e   : > { %s513_s11 = scalar_lea.vmem %s2372_s5, %s2158_s29  ;;  %s516_s12 = scalar_lea.vmem %s2374_s7, %s2158_s29 }
  0x8f   : > { %s1408_s30 = sshll.u32 %s2439_s23, 2  ;;  %s519_s10 = scalar_lea.vmem %s2375_s8, %s2158_s29 }
  0x90   : > { %s2175_s26 = scalar_lea.vmem %s2369_s2, %s1408_s30  ;;  %s522_s6 = scalar_lea.vmem %s2376_s9, %s2158_s29 }
  0x91   : > { %p526_p7 = pnand %p525_p2, %p524_p11 }
  0x92   : > { %s2418_s21 = sld [smem:[#allocation26_spill]] (!%p526_p7)  ;;  %vm546_vm0 = vcmask (!%p526_p7), 261120   ;;  %v1878_v3 = vmov (!%p526_p7), 0.0  }
  0x93   : > { %529 = sbr.rel (%p526_p7) target bundleno = 168 (0xa8), region = 80  ;;  %530 = vst [vmem:[#allocation2] sm:$0xff] (!%p526_p7), %v1878_v3  ;;  %531 = vst [vmem:[#allocation2 + $0x8] sm:$0xff] (!%p526_p7), %v1878_v3 }
  0x94   : > { %532 = vst [vmem:[#allocation2 + $0x10] sm:$0xff] (!%p526_p7), %v1878_v3  ;;  %533 = vst [vmem:[#allocation2 + $0x18] sm:$0xff] (!%p526_p7), %v1878_v3 }
  0x95   : > { %534 = vst [vmem:[#allocation2 + $0x20] sm:$0xff] (!%p526_p7), %v1878_v3  ;;  %535 = vst [vmem:[#allocation2 + $0x28] sm:$0xff] (!%p526_p7), %v1878_v3 }
  0x96   : > { %536 = vst [vmem:[#allocation2 + $0x30] sm:$0xff] (!%p526_p7), %v1878_v3  ;;  %537 = vst [vmem:[#allocation2 + $0x38] sm:$0xff] (!%p526_p7), %v1878_v3 }
  0x98   : > { %v538_v0 = vld [vmem:[%s2418_s21] sm:$0xff] (!%p526_p7)  ;;  %v539_v1 = vld [vmem:[%s2418_s21 + $0x8] sm:$0xff] (!%p526_p7)  ;;  %v540_v2 = vld [vmem:[%s2418_s21 + $0x10] sm:$0xff] (!%p526_p7) }
  0x99   : > { %v541_v4 = vld [vmem:[%s2418_s21 + $0x18] sm:$0xff] (!%p526_p7)  ;;  %v542_v5 = vld [vmem:[%s2418_s21 + $0x20] sm:$0xff] (!%p526_p7)  ;;  %v543_v6 = vld [vmem:[%s2418_s21 + $0x28] sm:$0xff] (!%p526_p7)  ;;  %547 = vst.msk [vmem:[#allocation2] sm:$0xff] (!%p526_p7), %vm546_vm0, %v538_v0 }
  0x9a   : > { %548 = vst.msk [vmem:[#allocation2 + $0x8] sm:$0xff] %vm546_vm0, %v539_v1  ;;  %549 = vst.msk [vmem:[#allocation2 + $0x10] sm:$0xff] %vm546_vm0, %v540_v2  ;;  %v544_v7 = vld [vmem:[%s2418_s21 + $0x30] sm:$0xff]  ;;  %v545_v8 = vld [vmem:[%s2418_s21 + $0x38] sm:$0xff] }
  0x9b   : > { %550 = vst.msk [vmem:[#allocation2 + $0x18] sm:$0xff] %vm546_vm0, %v541_v4  ;;  %551 = vst.msk [vmem:[#allocation2 + $0x20] sm:$0xff] %vm546_vm0, %v542_v5 }
  0x9c   : > { %552 = vst.msk [vmem:[#allocation2 + $0x28] sm:$0xff] %vm546_vm0, %v543_v6  ;;  %553 = vst.msk [vmem:[#allocation2 + $0x30] sm:$0xff] %vm546_vm0, %v544_v7 }
  0x9d   : > { %554 = vst.msk [vmem:[#allocation2 + $0x38] sm:$0xff] %vm546_vm0, %v545_v8 }
  0xa0   : > { %v555_v9 = vld [vmem:[#allocation2] sm:$0xff] }
  0xa1   : > { %v556_v10 = vld [vmem:[#allocation2 + $0x8] sm:$0xff]  ;;  %v557_v11 = vld [vmem:[#allocation2 + $0x10] sm:$0xff] }
  0xa2   : > { %v563_v12 = vpack.c.bf16 %v556_v10, %v555_v9  ;;  %v558_v13 = vld [vmem:[#allocation2 + $0x18] sm:$0xff]  ;;  %v559_v14 = vld [vmem:[#allocation2 + $0x20] sm:$0xff] }
  0xa3   : > { %v560_v15 = vld [vmem:[#allocation2 + $0x28] sm:$0xff]  ;;  %v564_v16 = vpack.c.bf16 %v558_v13, %v557_v11  ;;  %v561_v18 = vld [vmem:[#allocation2 + $0x30] sm:$0xff] }
  0xa4   : > { %v565_v17 = vpack.c.bf16 %v560_v15, %v559_v14  ;;  %v562_v19 = vld [vmem:[#allocation2 + $0x38] sm:$0xff]  ;;  %567 = vst [vmem:[#allocation3] sm:$0xff] %v563_v12 }
  0xa5   : > { %v566_v20 = vpack.c.bf16 %v562_v19, %v561_v18  ;;  %568 = vst [vmem:[#allocation3 + $0x8] sm:$0xff] %v564_v16 }
  0xa6   : > { %569 = vst [vmem:[#allocation3 + $0x10] sm:$0xff] %v565_v17 }
  0xa7   : > { %570 = vst [vmem:[#allocation3 + $0x18] sm:$0xff] %v566_v20 }
  0xa8 PF: > { %vm602_vm1 = vcmask 523264   ;;  %v1628_v23 = vld [vmem:[%s2175_s26] sm:$0xff]   ;;  %v1631_v26 = vld [vmem:[%s2142_s4 + $0x8] sm:$0xff]   ;;  %v1632_v28 = vld [vmem:[%s2142_s4 + $0x10] sm:$0xff]   ;;  %s1409_s25 = sshll.u32 %s1854_s16, 5  ;;  %p943_p4 = scmp.eq.s32.totalorder %s1854_s16, 1 }
  0xa9   : > { %1475 = vmatprep.mubr.msk.bf16.mxu0 %vm602_vm1, %v1628_v23  ;;  %v1630_v25 = vld [vmem:[%s2142_s4] sm:$0xff]   ;;  %v1633_v29 = vld [vmem:[%s2142_s4 + $0x18] sm:$0xff]   ;;  %v1629_v30 = vld [vmem:[%s2175_s26 + $0x8] sm:$0xff]   ;;  %s572_s26 = sld [smem:[#allocation5 + %s1858_s17]]  ;;  %s582_s27 = scalar_lea.vmem [#allocation2], %s1409_s25 }
  0xaa   : > { %1479 = vmatprep.subr.bf16.mxu1 %v1630_v25  ;;  %v1634_v31 = vld [vmem:[%s2142_s4 + $0x20] sm:$0xff]   ;;  %v1635_v32 = vld [vmem:[%s2142_s4 + $0x28] sm:$0xff]   ;;  %v1636_v33 = vld [vmem:[%s2142_s4 + $0x30] sm:$0xff]   ;;  %s938_s3 = scalar_lea.vmem [#allocation4], %s1409_s25  ;;  %p1432_p9 = scmp.ne.s32.totalorder %s1854_s16, 1 }
  0xab   : > { %v577_v21 = vld [vmem:[#allocation3] sm:$0xff]  ;;  %1480 = vmatpush3.bf16.msra.mxu1 %v1630_v25  ;;  %v1637_v34 = vld [vmem:[%s2142_s4 + $0x38] sm:$0xff]   ;;  %v1639_v55 = vld [vmem:[%s2148_s18 + $0x8] sm:$0xff]  }
  0xac   : > { %v578_v22 = vld [vmem:[#allocation3 + $0x8] sm:$0xff]  ;;  %1467 = vmatprep.subr.bf16.mxu0 %v577_v21  ;;  %1481 = vmatprep.subr.bf16.mxu1 %v1631_v26  ;;  %v1638_v54 = vld [vmem:[%s2148_s18] sm:$0xff]   ;;  %v1640_v56 = vld [vmem:[%s2148_s18 + $0x10] sm:$0xff]  }
  0xad   : > { %1468 = vmatpush3.bf16.msra.mxu0 %v577_v21  ;;  %v579_v24 = vld [vmem:[#allocation3 + $0x10] sm:$0xff]  ;;  %v1641_v57 = vld [vmem:[%s2148_s18 + $0x18] sm:$0xff]   ;;  %v1642_v58 = vld [vmem:[%s2148_s18 + $0x20] sm:$0xff]  }
  0xae   : > { %1469 = vmatprep.subr.bf16.mxu0 %v578_v22  ;;  %v580_v27 = vld [vmem:[#allocation3 + $0x18] sm:$0xff]  ;;  %v1643_v59 = vld [vmem:[%s2148_s18 + $0x28] sm:$0xff]   ;;  %v1644_v60 = vld [vmem:[%s2148_s18 + $0x30] sm:$0xff]  }
  0xaf   : > { %1482 = vmatpush3.bf16.msra.mxu1 %v1631_v26  ;;  %s581_s30 = sadd.f32 1.0, %s572_s26  ;;  %v585_v35 = vld [vmem:[%s582_s27 + $0x10] sm:$0xff]  ;;  %v586_v37 = vld [vmem:[%s582_s27 + $0x18] sm:$0xff]  ;;  %v583_v38 = vld [vmem:[%s582_s27] sm:$0xff] }
  0xb0   : > { %1483 = vmatprep.subr.bf16.mxu1 %v1632_v28  ;;  %v584_v39 = vld [vmem:[%s582_s27 + $0x8] sm:$0xff]  ;;  %v1645_v61 = vld [vmem:[%s2148_s18 + $0x38] sm:$0xff]   ;;  %v1414_v62 = vld [vmem:[%s513_s11] ss:$0 sm:$0xff] }
  0xb1   : > { %1470 = vmatpush3.bf16.msra.mxu0 %v578_v22  ;;  %v587_v36 = vstv %s581_s30 }
  0xb2   : > { %1471 = vmatprep.subr.bf16.mxu0 %v579_v24  ;;  %v590_v40 = vmul.f32 %v587_v36, %v585_v35  ;;  %v591_v41 = vmul.f32 %v587_v36, %v586_v37  ;;  %v588_v43 = vmul.f32 %v587_v36, %v583_v38  ;;  %v589_v44 = vmul.f32 %v587_v36, %v584_v39 }
  0xb3   : > { %1484 = vmatpush3.bf16.msra.mxu1 %v1632_v28 }
  0xb4   : > { %1485 = vmatprep.subr.bf16.mxu1 %v1633_v29 }
  0xb5   : > { %1472 = vmatpush3.bf16.msra.mxu0 %v579_v24 }
  0xb6   : > { %1473 = vmatprep.subr.bf16.mxu0 %v580_v27 }
  0xb7   : > { %1486 = vmatpush3.bf16.msra.mxu1 %v1633_v29 }
  0xb8   : > { %1487 = vmatprep.subr.bf16.mxu1 %v1634_v31 }
  0xb9   : > { %1474 = vmatpush3.bf16.msra.mxu0 %v580_v27 }
  0xba   : > { %1499 = vmatprep.subr.bf16.mxu0 %v1638_v54 }
  0xbb   : > { %1488 = vmatpush3.bf16.msra.mxu1 %v1634_v31 }
  0xbc   : > { %1476 = vmatmul.mubr.msk.bf16.vlgmr.msra.gmra.mrb[0].mxu0 %vm602_vm1, %v1629_v30  ;;  %1489 = vmatprep.subr.bf16.mxu1 %v1635_v32 }
  0xbd   : > { %1500 = vmatpush3.bf16.msra.mxu0 %v1638_v54 }
  0xbe   : > { %1501 = vmatprep.subr.bf16.mxu0 %v1639_v55 }
  0xbf   : > { %1490 = vmatpush3.bf16.msra.mxu1 %v1635_v32 }
  0xc0   : > { %1491 = vmatprep.subr.bf16.mxu1 %v1636_v33 }
  0xc1   : > { %1502 = vmatpush3.bf16.msra.mxu0 %v1639_v55 }
  0xc2   : > { %1503 = vmatprep.subr.bf16.mxu0 %v1640_v56 }
  0xc3   : > { %1492 = vmatpush3.bf16.msra.mxu1 %v1636_v33 }
  0xc4   : > { %1493 = vmatprep.subr.bf16.mxu1 %v1637_v34 }
  0xc5   : > { %1504 = vmatpush3.bf16.msra.mxu0 %v1640_v56 }
  0xc6   : > { %1505 = vmatprep.subr.bf16.mxu0 %v1641_v57 }
  0xc7   : > { %1494 = vmatpush3.bf16.msra.mxu1 %v1637_v34 }
  0xc9   : > { %1506 = vmatpush3.bf16.msra.mxu0 %v1641_v57 }
  0xca   : > { %1507 = vmatprep.subr.bf16.mxu0 %v1642_v58 }
  0xcd   : > { %1508 = vmatpush3.bf16.msra.mxu0 %v1642_v58 }
  0xce   : > { %1509 = vmatprep.subr.bf16.mxu0 %v1643_v59 }
  0xd1   : > { %1510 = vmatpush3.bf16.msra.mxu0 %v1643_v59 }
  0xd2   : > { %1511 = vmatprep.subr.bf16.mxu0 %v1644_v60 }
  0xd5   : > { %1512 = vmatpush3.bf16.msra.mxu0 %v1644_v60 }
  0xd6   : > { %1513 = vmatprep.subr.bf16.mxu0 %v1645_v61 }
  0xd9   : > { %1514 = vmatpush3.bf16.msra.mxu0 %v1645_v61 }
 0x18f   : > { %v1477_v42 = vpop.f32.mrb[0].mxu0 }
 0x190   : > { %v643_v45 = vpop.f32.mrb[1].mxu0  ;;  %v652_v47 = vadd.f32 %v1477_v42, %v590_v40 }
 0x191   : > { %v1478_v46 = vpop.f32.mrb[2].mxu0  ;;  %v644_v50 = vadd.f32 %v643_v45, %v588_v43  ;;  %v1423_v45 = vld [vmem:[%s516_s12] ss:$0 sm:$0xff] }
 0x192   : > { %v655_v48 = vadd.f32 %v1478_v46, %v591_v41  ;;  %v646_v49 = vpop.f32.mrb[3].mxu0 }
 0x193   : > { %v647_v51 = vadd.f32 %v646_v49, %v589_v44 }
 0x194   : > { %v659_v52 = vpack.c.bf16 %v655_v48, %v652_v47 }
 0x195   : > { %v658_v53 = vpack.c.bf16 %v647_v51, %v644_v50 }
 0x197   : > { %1495 = vmatprep.mubr.bf16.mxu1 %v658_v53 }
 0x198   : > { %1496 = vmatmul.mubr.bf16.vlgmr.msra.gmra.mrb[0].mxu1 %v659_v52 }
 0x26b   : > { %v1497_v63 = vpop.f32.mrb[0].mxu1 }
 0x26c   : > { %v774_v0 = vadd.f32 %v1497_v63, %v1414_v62  ;;  %v765_v1 = vpop.f32.mrb[1].mxu1 }
 0x26d   : > { %v766_v2 = vadd.f32 %v1414_v62, %v765_v1  ;;  %v1498_v3 = vpop.f32.mrb[2].mxu1 }
 0x26e   : > { %v786_v4 = vmul.f32 0.044715, %v774_v0  ;;  %v777_v5 = vadd.f32 %v1498_v3, %v1414_v62  ;;  %v768_v6 = vpop.f32.mrb[3].mxu1  ;;  %v782_v33 = vmul.f32 0.5, %v774_v0 }
 0x26f   : > { %v784_v7 = vmul.f32 0.044715, %v766_v2  ;;  %v769_v8 = vadd.f32 %v1414_v62, %v768_v6  ;;  %v780_v36 = vmul.f32 0.5, %v766_v2 }
 0x270   : > { %v790_v9 = vmul.f32 %v786_v4, %v774_v0  ;;  %v787_v10 = vmul.f32 0.044715, %v777_v5  ;;  %v783_v34 = vmul.f32 0.5, %v777_v5 }
 0x271   : > { %v788_v11 = vmul.f32 %v784_v7, %v766_v2  ;;  %v785_v12 = vmul.f32 0.044715, %v769_v8  ;;  %v781_v37 = vmul.f32 0.5, %v769_v8 }
 0x272   : > { %v794_v13 = vmul.f32 %v790_v9, %v774_v0  ;;  %v791_v14 = vmul.f32 %v787_v10, %v777_v5 }
 0x273   : > { %v792_v15 = vmul.f32 %v788_v11, %v766_v2  ;;  %v789_v16 = vmul.f32 %v785_v12, %v769_v8 }
 0x274   : > { %v798_v17 = vadd.f32 %v794_v13, %v774_v0  ;;  %v795_v18 = vmul.f32 %v791_v14, %v777_v5 }
 0x275   : > { %v793_v19 = vmul.f32 %v789_v16, %v769_v8  ;;  %v796_v20 = vadd.f32 %v792_v15, %v766_v2 }
 0x276   : > { %v802_v21 = vmul.f32 0.7978846, %v798_v17  ;;  %v799_v22 = vadd.f32 %v795_v18, %v777_v5 }
 0x277   : > { %v797_v23 = vadd.f32 %v793_v19, %v769_v8  ;;  %v800_v24 = vmul.f32 0.7978846, %v796_v20 }
 0x278   : > { %1646 = vtanh.f32 %v802_v21  ;;  %v803_v25 = vmul.f32 0.7978846, %v799_v22 }
 0x279   : > { %v801_v26 = vmul.f32 0.7978846, %v797_v23  ;;  %1648 = vtanh.f32 %v800_v24 }
 0x27a   : > { %1650 = vtanh.f32 %v803_v25 }
 0x27b   : > { %1652 = vtanh.f32 %v801_v26 }
 0x282   : > { %v1647_v27 = vpop.eup %1646 }
 0x283   : > { %v1649_v28 = vpop.eup %1648  ;;  %v810_v29 = vadd.f32 1.0, %v1647_v27 }
 0x284   : > { %v1651_v30 = vpop.eup %1650  ;;  %v808_v31 = vadd.f32 1.0, %v1649_v28 }
 0x285   : > { %v1653_v32 = vpop.eup %1652  ;;  %v811_v35 = vadd.f32 1.0, %v1651_v30  ;;  %v814_v39 = vmul.f32 %v810_v29, %v782_v33 }
 0x286   : > { %v809_v38 = vadd.f32 1.0, %v1653_v32  ;;  %v812_v41 = vmul.f32 %v808_v31, %v780_v36 }
 0x287   : > { %v815_v40 = vmul.f32 %v811_v35, %v783_v34 }
 0x288   : > { %v813_v42 = vmul.f32 %v809_v38, %v781_v37 }
 0x289   : > { %v817_v43 = vpack.c.bf16 %v815_v40, %v814_v39 }
 0x28a   : > { %v816_v44 = vpack.c.bf16 %v813_v42, %v812_v41 }
 0x28c   : > { %1515 = vmatprep.mubr.bf16.mxu0 %v816_v44  ;;  %v1433_v44 = vld [vmem:[%s519_s10] ss:$0 sm:$0xff] (!%p1432_p9) }
 0x28d   : > { %1516 = vmatmul.mubr.bf16.vlgmr.msra.gmra.mrb[4].mxu0 %v817_v43 }
 0x360   : > { %v1517_v46 = vpop.f32.mrb[4].mxu0  ;;  %946 = sbr.rel (%p1432_p9) target bundleno = 994 (0x3e2), region = 84 }
 0x361   : > { %v932_v47 = vadd.f32 %v1517_v46, %v1423_v45  ;;  %v923_v48 = vpop.f32.mrb[5].mxu0 }
 0x362   : > { %v924_v49 = vadd.f32 %v1423_v45, %v923_v48  ;;  %v1518_v50 = vpop.f32.mrb[6].mxu0 }
 0x363   : > { %941 = vst [vmem:[%s938_s3 + $0x10] sm:$0xff] %v932_v47  ;;  %v935_v51 = vadd.f32 %v1518_v50, %v1423_v45  ;;  %v926_v52 = vpop.f32.mrb[7].mxu0 }
 0x364   : > { %939 = vst [vmem:[%s938_s3] sm:$0xff] %v924_v49  ;;  %v927_v53 = vadd.f32 %v1423_v45, %v926_v52  ;;  %v1434_v49 = vld [vmem:[%s522_s6] ss:$0 sm:$0xff] (!%p1432_p9)  ;;  %s1160_s6 = sld [smem:[#allocation9 + %s1858_s17]] (!%p1432_p9) }
 0x365   : > { %942 = vst [vmem:[%s938_s3 + $0x18] sm:$0xff] %v935_v51 }
 0x366   : > { %940 = vst [vmem:[%s938_s3 + $0x8] sm:$0xff] %v927_v53 }
 0x36d   : > { %v947_v54 = vld [vmem:[#allocation4] sm:$0xff]  ;;  %v948_v55 = vld [vmem:[#allocation4 + $0x8] sm:$0xff]  ;;  %v949_v56 = vld [vmem:[#allocation4 + $0x10] sm:$0xff] }
 0x36e   : > { %v996_v57 = vadd.f32 %v948_v55, %v947_v54  ;;  %v950_v58 = vld [vmem:[#allocation4 + $0x18] sm:$0xff]  ;;  %v951_v60 = vld [vmem:[#allocation4 + $0x20] sm:$0xff]  ;;  %v952_v62 = vld [vmem:[#allocation4 + $0x28] sm:$0xff] }
 0x36f   : > { %v953_v0 = vld [vmem:[#allocation4 + $0x30] sm:$0xff]  ;;  %v954_v2 = vld [vmem:[#allocation4 + $0x38] sm:$0xff] }
 0x370   : > { %v997_v59 = vadd.f32 %v996_v57, %v949_v56 }
 0x372   : > { %v998_v61 = vadd.f32 %v997_v59, %v950_v58 }
 0x374   : > { %v999_v63 = vadd.f32 %v998_v61, %v951_v60 }
 0x376   : > { %v1000_v1 = vadd.f32 %v999_v63, %v952_v62 }
 0x378   : > { %v1001_v3 = vadd.f32 %v1000_v1, %v953_v0 }
 0x37a   : > { %v1002_v4 = vadd.f32 %v1001_v3, %v954_v2 }
 0x37c   : > { %v1003_v5 = vrot.slane %v1002_v4, 4 }
 0x37e   : > { %v1004_v6 = vadd.f32 %v1003_v5, %v1002_v4 }
 0x380   : > { %v1005_v7 = vrot.slane %v1004_v6, 2 }
 0x382   : > { %v1006_v8 = vadd.f32 %v1005_v7, %v1004_v6 }
 0x384   : > { %v1007_v9 = vrot.slane %v1006_v8, 1 }
 0x386   : > { %v1008_v10 = vadd.f32 %v1007_v9, %v1006_v8 }
 0x388   : > { %v1009_v11 = vmul.f32 0.015625, %v1008_v10 }
 0x38a   : > { %v1010_v12 = vsub.f32 %v947_v54, %v1009_v11  ;;  %v1011_v13 = vsub.f32 %v948_v55, %v1009_v11  ;;  %v1012_v14 = vsub.f32 %v949_v56, %v1009_v11  ;;  %v1013_v15 = vsub.f32 %v950_v58, %v1009_v11 }
 0x38b   : > { %v1014_v16 = vsub.f32 %v951_v60, %v1009_v11  ;;  %v1015_v20 = vsub.f32 %v952_v62, %v1009_v11  ;;  %v1016_v23 = vsub.f32 %v953_v0, %v1009_v11  ;;  %v1017_v26 = vsub.f32 %v954_v2, %v1009_v11 }
 0x38c   : > { %v1026_v17 = vmul.f32 %v1010_v12, %v1010_v12  ;;  %v1027_v18 = vmul.f32 %v1011_v13, %v1011_v13  ;;  %v1028_v19 = vmul.f32 %v1012_v14, %v1012_v14  ;;  %v1029_v21 = vmul.f32 %v1013_v15, %v1013_v15 }
 0x38d   : > { %v1030_v24 = vmul.f32 %v1014_v16, %v1014_v16  ;;  %v1031_v27 = vmul.f32 %v1015_v20, %v1015_v20  ;;  %v1032_v29 = vmul.f32 %v1016_v23, %v1016_v23  ;;  %v1033_v31 = vmul.f32 %v1017_v26, %v1017_v26 }
 0x38e   : > { %v1034_v22 = vadd.f32 %v1027_v18, %v1026_v17 }
 0x390   : > { %v1035_v25 = vadd.f32 %v1034_v22, %v1028_v19 }
 0x392   : > { %v1036_v28 = vadd.f32 %v1035_v25, %v1029_v21 }
 0x394   : > { %v1037_v30 = vadd.f32 %v1036_v28, %v1030_v24 }
 0x396   : > { %v1038_v32 = vadd.f32 %v1037_v30, %v1031_v27 }
 0x398   : > { %v1039_v33 = vadd.f32 %v1038_v32, %v1032_v29 }
 0x39a   : > { %v1040_v34 = vadd.f32 %v1039_v33, %v1033_v31 }
 0x39c   : > { %v1041_v35 = vrot.slane %v1040_v34, 4 }
 0x39e   : > { %v1042_v36 = vadd.f32 %v1041_v35, %v1040_v34 }
 0x3a0   : > { %v1043_v37 = vrot.slane %v1042_v36, 2 }
 0x3a2   : > { %v1044_v38 = vadd.f32 %v1043_v37, %v1042_v36 }
 0x3a4   : > { %v1045_v39 = vrot.slane %v1044_v38, 1 }
 0x3a6   : > { %v1046_v40 = vadd.f32 %v1045_v39, %v1044_v38 }
 0x3a8   : > { %v1047_v41 = vmul.f32 0.015625, %v1046_v40 }
 0x3aa   : > { %v1048_v42 = vadd.f32 1e-05, %v1047_v41 }
 0x3ac   : > { %1654 = vrsqrt.f32 %v1048_v42 }
 0x3b6   : > { %v1655_v43 = vpop.eup %1654 }
 0x3b7   : > { %v1050_v45 = vmul.f32 %v1655_v43, %v1010_v12  ;;  %v1051_v46 = vmul.f32 %v1655_v43, %v1011_v13  ;;  %v1052_v47 = vmul.f32 %v1655_v43, %v1012_v14  ;;  %v1053_v48 = vmul.f32 %v1655_v43, %v1013_v15 }
 0x3b8   : > { %v1054_v50 = vmul.f32 %v1655_v43, %v1014_v16  ;;  %v1055_v51 = vmul.f32 %v1655_v43, %v1015_v20  ;;  %v1056_v52 = vmul.f32 %v1655_v43, %v1016_v23  ;;  %v1057_v53 = vmul.f32 %v1655_v43, %v1017_v26 }
 0x3b9   : > { %v1065_v54 = vmul.f32 %v1433_v44, %v1050_v45  ;;  %v1066_v55 = vmul.f32 %v1433_v44, %v1051_v46  ;;  %v1067_v56 = vmul.f32 %v1433_v44, %v1052_v47  ;;  %v1068_v57 = vmul.f32 %v1433_v44, %v1053_v48  ;;  %v1161_v46 = vld [vmem:[#allocation2] sm:$0xff]  ;;  %v1162_v48 = vld [vmem:[#allocation2 + $0x8] sm:$0xff] }
 0x3ba   : > { %v1069_v58 = vmul.f32 %v1433_v44, %v1054_v50  ;;  %v1070_v59 = vmul.f32 %v1433_v44, %v1055_v51  ;;  %v1071_v60 = vmul.f32 %v1433_v44, %v1056_v52  ;;  %v1072_v5 = vmul.f32 %v1433_v44, %v1057_v53  ;;  %v1163_v50 = vld [vmem:[#allocation2 + $0x10] sm:$0xff]  ;;  %v1164_v51 = vld [vmem:[#allocation2 + $0x18] sm:$0xff] }
 0x3bb   : > { %v1080_v61 = vadd.f32 %v1434_v49, %v1065_v54  ;;  %v2262_v62 = vadd.f32 %v1434_v49, %v1066_v55  ;;  %v2264_v63 = vadd.f32 %v1434_v49, %v1067_v56  ;;  %v2266_v0 = vadd.f32 %v1434_v49, %v1068_v57  ;;  %v1165_v54 = vld [vmem:[#allocation2 + $0x20] sm:$0xff] }
 0x3bc   : > { %v2268_v1 = vadd.f32 %v1434_v49, %v1069_v58  ;;  %v2270_v2 = vadd.f32 %v1434_v49, %v1070_v59  ;;  %v2275_v8 = vadd.f32 %v1434_v49, %v1071_v60  ;;  %v2284_v18 = vadd.f32 %v1434_v49, %v1072_v5  ;;  %v1166_v60 = vld [vmem:[#allocation2 + $0x28] sm:$0xff] }
 0x3bd   : > { %v1096_v3 = vmul.f32 0.044715, %v1080_v61  ;;  %v1097_v4 = vmul.f32 0.044715, %v2262_v62  ;;  %v1098_v6 = vmul.f32 0.044715, %v2264_v63  ;;  %v1169_v47 = vstv %s1160_s6 }
 0x3be   : > { %v1099_v7 = vmul.f32 0.044715, %v2266_v0  ;;  %v1100_v11 = vmul.f32 0.044715, %v2268_v1  ;;  %v1101_v14 = vmul.f32 0.044715, %v2270_v2  ;;  %v1170_v57 = vmul.f32 %v1169_v47, %v1161_v46 }
 0x3bf   : > { %v1104_v9 = vmul.f32 %v1096_v3, %v1080_v61  ;;  %v1105_v10 = vmul.f32 %v1097_v4, %v2262_v62  ;;  %v1106_v12 = vmul.f32 %v1098_v6, %v2264_v63  ;;  %v1102_v22 = vmul.f32 0.044715, %v2275_v8 }
 0x3c0   : > { %v1107_v13 = vmul.f32 %v1099_v7, %v2266_v0  ;;  %v1108_v17 = vmul.f32 %v1100_v11, %v2268_v1  ;;  %v1109_v21 = vmul.f32 %v1101_v14, %v2270_v2  ;;  %v1103_v33 = vmul.f32 0.044715, %v2284_v18 }
 0x3c1   : > { %v1112_v15 = vmul.f32 %v1104_v9, %v1080_v61  ;;  %v1113_v16 = vmul.f32 %v1105_v10, %v2262_v62  ;;  %v1114_v19 = vmul.f32 %v1106_v12, %v2264_v63  ;;  %v1110_v29 = vmul.f32 %v1102_v22, %v2275_v8  ;;  %v1167_v12 = vld [vmem:[#allocation2 + $0x30] sm:$0xff] }
 0x3c2   : > { %v1115_v20 = vmul.f32 %v1107_v13, %v2266_v0  ;;  %v1116_v25 = vmul.f32 %v1108_v17, %v2268_v1  ;;  %v1117_v28 = vmul.f32 %v1109_v21, %v2270_v2  ;;  %v1111_v39 = vmul.f32 %v1103_v33, %v2284_v18 }
 0x3c3   : > { %v1120_v23 = vadd.f32 %v1112_v15, %v1080_v61  ;;  %v1121_v24 = vadd.f32 %v1113_v16, %v2262_v62  ;;  %v1122_v26 = vadd.f32 %v1114_v19, %v2264_v63  ;;  %v1118_v37 = vmul.f32 %v1110_v29, %v2275_v8 }
 0x3c4   : > { %v1123_v27 = vadd.f32 %v1115_v20, %v2266_v0  ;;  %v1124_v32 = vadd.f32 %v1116_v25, %v2268_v1  ;;  %v1125_v36 = vadd.f32 %v1117_v28, %v2270_v2  ;;  %v1119_v42 = vmul.f32 %v1111_v39, %v2284_v18 }
 0x3c5   : > { %v1128_v30 = vmul.f32 0.7978846, %v1120_v23  ;;  %v1129_v31 = vmul.f32 0.7978846, %v1121_v24  ;;  %v1130_v34 = vmul.f32 0.7978846, %v1122_v26  ;;  %v1126_v41 = vadd.f32 %v1118_v37, %v2275_v8 }
 0x3c6   : > { %v1131_v35 = vmul.f32 0.7978846, %v1123_v27  ;;  %v1132_v38 = vmul.f32 0.7978846, %v1124_v32  ;;  %v1133_v40 = vmul.f32 0.7978846, %v1125_v36  ;;  %v1127_v44 = vadd.f32 %v1119_v42, %v2284_v18 }
 0x3c7   : > { %1656 = vtanh.f32 %v1128_v30  ;;  %v1134_v43 = vmul.f32 0.7978846, %v1126_v41  ;;  %v1088_v49 = vmul.f32 0.5, %v1080_v61  ;;  %v1089_v53 = vmul.f32 0.5, %v2262_v62 }
 0x3c8   : > { %1658 = vtanh.f32 %v1129_v31  ;;  %v1135_v45 = vmul.f32 0.7978846, %v1127_v44  ;;  %v1171_v58 = vmul.f32 %v1169_v47, %v1162_v48  ;;  %v1090_v59 = vmul.f32 0.5, %v2264_v63 }
 0x3c9   : > { %1660 = vtanh.f32 %v1130_v34  ;;  %v1172_v5 = vmul.f32 %v1169_v47, %v1163_v50  ;;  %v1091_v6 = vmul.f32 0.5, %v2266_v0  ;;  %v1173_v7 = vmul.f32 %v1169_v47, %v1164_v51 }
 0x3ca   : > { %1662 = vtanh.f32 %v1131_v35  ;;  %v1092_v11 = vmul.f32 0.5, %v2268_v1  ;;  %v1174_v62 = vmul.f32 %v1169_v47, %v1165_v54  ;;  %v1093_v16 = vmul.f32 0.5, %v2270_v2  ;;  %v1168_v1 = vld [vmem:[#allocation2 + $0x38] sm:$0xff] }
 0x3cb   : > { %1664 = vtanh.f32 %v1132_v38  ;;  %v1175_v63 = vmul.f32 %v1169_v47, %v1166_v60  ;;  %v1094_v0 = vmul.f32 0.5, %v2275_v8  ;;  %v1176_v26 = vmul.f32 %v1169_v47, %v1167_v12 }
 0x3cc   : > { %1666 = vtanh.f32 %v1133_v40  ;;  %v1095_v30 = vmul.f32 0.5, %v2284_v18  ;;  %v1177_v36 = vmul.f32 %v1169_v47, %v1168_v1 }
 0x3cd   : > { %1668 = vtanh.f32 %v1134_v43 }
 0x3ce   : > { %1670 = vtanh.f32 %v1135_v45 }
 0x3d1   : > { %v1657_v52 = vpop.eup %1656 }
 0x3d2   : > { %v1659_v55 = vpop.eup %1658  ;;  %v1144_v56 = vadd.f32 1.0, %v1657_v52 }
 0x3d3   : > { %v1661_v3 = vpop.eup %1660  ;;  %v1145_v4 = vadd.f32 1.0, %v1659_v55 }
 0x3d4   : > { %v1663_v61 = vpop.eup %1662  ;;  %v1152_v9 = vmul.f32 %v1144_v56, %v1088_v49  ;;  %v1146_v10 = vadd.f32 1.0, %v1661_v3 }
 0x3d5   : > { %v1665_v13 = vpop.eup %1664  ;;  %v1153_v14 = vmul.f32 %v1145_v4, %v1089_v53  ;;  %v1147_v15 = vadd.f32 1.0, %v1663_v61 }
 0x3d6   : > { %v1667_v17 = vpop.eup %1666  ;;  %v1178_v19 = vadd.f32 %v1170_v57, %v1152_v9  ;;  %v1154_v20 = vmul.f32 %v1146_v10, %v1090_v59  ;;  %v1148_v21 = vadd.f32 1.0, %v1665_v13 }
 0x3d7   : > { %v1669_v22 = vpop.eup %1668  ;;  %v1179_v23 = vadd.f32 %v1171_v58, %v1153_v14  ;;  %v1155_v24 = vmul.f32 %v1147_v15, %v1091_v6  ;;  %v1149_v25 = vadd.f32 1.0, %v1667_v17 }
 0x3d8   : > { %1186 = vst [vmem:[#allocation2] sm:$0xff] %v1178_v19  ;;  %v1180_v27 = vadd.f32 %v1172_v5, %v1154_v20  ;;  %v1156_v28 = vmul.f32 %v1148_v21, %v1092_v11  ;;  %v1150_v29 = vadd.f32 1.0, %v1669_v22  ;;  %v1671_v2 = vpop.eup %1670 }
 0x3d9   : > { %1187 = vst [vmem:[#allocation2 + $0x8] sm:$0xff] %v1179_v23  ;;  %v1181_v31 = vadd.f32 %v1173_v7, %v1155_v24  ;;  %v1157_v32 = vmul.f32 %v1149_v25, %v1093_v16  ;;  %v1194_v33 = vpack.c.bf16 %v1179_v23, %v1178_v19  ;;  %v1151_v35 = vadd.f32 1.0, %v1671_v2 }
 0x3da   : > { %1188 = vst [vmem:[#allocation2 + $0x10] sm:$0xff] %v1180_v27  ;;  %v1182_v34 = vadd.f32 %v1174_v62, %v1156_v28  ;;  %v1158_v8 = vmul.f32 %v1150_v29, %v1094_v0 }
 0x3db   : > { %1189 = vst [vmem:[#allocation2 + $0x18] sm:$0xff] %v1181_v31  ;;  %v1183_v37 = vadd.f32 %v1175_v63, %v1157_v32  ;;  %1198 = vst [vmem:[#allocation3] sm:$0xff] %v1194_v33  ;;  %v1195_v38 = vpack.c.bf16 %v1181_v31, %v1180_v27  ;;  %v1159_v40 = vmul.f32 %v1151_v35, %v1095_v30 }
 0x3dc   : > { %1190 = vst [vmem:[#allocation2 + $0x20] sm:$0xff] %v1182_v34  ;;  %v1184_v39 = vadd.f32 %v1176_v26, %v1158_v8 }
 0x3dd   : > { %1191 = vst [vmem:[#allocation2 + $0x28] sm:$0xff] %v1183_v37  ;;  %1199 = vst [vmem:[#allocation3 + $0x8] sm:$0xff] %v1195_v38  ;;  %v1196_v18 = vpack.c.bf16 %v1183_v37, %v1182_v34  ;;  %v1185_v41 = vadd.f32 %v1177_v36, %v1159_v40 }
 0x3de   : > { %1192 = vst [vmem:[#allocation2 + $0x30] sm:$0xff] %v1184_v39 }
 0x3df   : > { %1200 = vst [vmem:[#allocation3 + $0x10] sm:$0xff] %v1196_v18  ;;  %1193 = vst [vmem:[#allocation2 + $0x38] sm:$0xff] %v1185_v41  ;;  %v1197_v42 = vpack.c.bf16 %v1185_v41, %v1184_v39 }
 0x3e1   : > { %1201 = vst [vmem:[#allocation3 + $0x18] sm:$0xff] %v1197_v42 }
 0x3e2 PF: > { %p1202_p5 = scmp.eq.s32.totalorder %s1858_s17, 1 }
 0x3e4   : > { %p1203_p8 = pnand %p1202_p5, %p943_p4 }
 0x3e5   : > { %v1207_v43 = vld [vmem:[#allocation2] sm:$0xff] (!%p1203_p8)  ;;  %v1208_v44 = vld [vmem:[#allocation2 + $0x8] sm:$0xff] (!%p1203_p8)  ;;  %v1209_v45 = vld [vmem:[#allocation2 + $0x10] sm:$0xff] (!%p1203_p8) }
 0x3e6   : > { %1206 = sbr.rel (%p1203_p8) target bundleno = 1005 (0x3ed), region = 88  ;;  %1215 = vst [vmem:[#allocation14] sm:$0xff] (!%p1203_p8), %v1207_v43  ;;  %1216 = vst [vmem:[#allocation14 + $0x8] sm:$0xff] (!%p1203_p8), %v1208_v44  ;;  %v1210_v46 = vld [vmem:[#allocation2 + $0x18] sm:$0xff] (!%p1203_p8)  ;;  %v1211_v47 = vld [vmem:[#allocation2 + $0x20] sm:$0xff] (!%p1203_p8) }
 0x3e7   : > { %1217 = vst [vmem:[#allocation14 + $0x10] sm:$0xff] (!%p1203_p8), %v1209_v45  ;;  %v1212_v48 = vld [vmem:[#allocation2 + $0x28] sm:$0xff] (!%p1203_p8)  ;;  %1218 = vst [vmem:[#allocation14 + $0x18] sm:$0xff] (!%p1203_p8), %v1210_v46  ;;  %v1213_v49 = vld [vmem:[#allocation2 + $0x30] sm:$0xff] (!%p1203_p8) }
 0x3e8   : > { %1219 = vst [vmem:[#allocation14 + $0x20] sm:$0xff] (!%p1203_p8), %v1211_v47  ;;  %1220 = vst [vmem:[#allocation14 + $0x28] sm:$0xff] (!%p1203_p8), %v1212_v48  ;;  %v1214_v50 = vld [vmem:[#allocation2 + $0x38] sm:$0xff] (!%p1203_p8) }
 0x3e9   : > { %1221 = vst [vmem:[#allocation14 + $0x30] sm:$0xff] (!%p1203_p8), %v1213_v49  ;;  %1222 = vst [vmem:[#allocation14 + $0x38] sm:$0xff] (!%p1203_p8), %v1214_v50 }
 0x3ed PF: > { %s2419_s16 = sld [smem:[#allocation21_spill]]  ;;  %s1879_s10 = smov [#allocation14]  }
 0x3ee   : > { %s1229_s23 = sshll.u32 %s1879_s10, 4  ;;  %s1230_s23 = int_to_ptr.vmem [resolvable:$true] %s1229_s23 }
 0x3ef   : > { %s1762_s22 = scalar_lea.vmem %s1230_s23, 1024  ;;  %p1769_p12 = scmp.lt.s32.totalorder %s1230_s23, %s1230_s23 }
 0x3f0   : > { %p1763_p1 = scmp.ne.s32.totalorder %s1230_s23, %s1762_s22  ;;  %p1770_p6 = scmp.lt.s32.totalorder %s1762_s22, %s1762_s22 }
 0x3f2   : > { %p1771_p3 = por %p1770_p6, %p1769_p12 }
 0x3f3   : > { %s2420_s17 = sadd.s32 4294967295, %s2419_s16  }
 0x3f4   : > { %p2317_p13 = scmp.eq.s32.totalorder %s2420_s17, 3 }
 0x3f6   : > { %p1764_p0 = pnand %p1763_p1, %p2317_p13 }
 0x3f8   : > { %p1765_p10 = pneg %p1764_p0 }
 0x3fa   : > { %p1772_p11 = pnand %p1771_p3, %p1765_p10 }
 0x3fc   : > { %1775 = shalt.err (!%p1772_p11)
}
 0x3fd   : > { %s2422_s25 = sld [smem:[#allocation29_spill]] }
 0x403   : > { %s1776_s30 = scalar_lea.hbm %s2422_s25, 1024 }
 0x404   : > { %p1777_p2 = scmp.ne.s32.totalorder %s2422_s25, %s1776_s30  ;;  %p1782_p9 = scmp.lt.u32.totalorder %s1776_s30, %s2422_s25 }
 0x406   : > { %p1778_p7 = pnand %p1777_p2, %p2317_p13 }
 0x408   : > { %p1779_p4 = pneg %p1778_p7 }
 0x40a   : > { %p1784_p5 = pnand %p1782_p9, %p1779_p4 }
 0x40c   : > { %1787 = shalt.err (!%p1784_p5)
}
 0x40d   : > { %s1880_s11 = smov 128   ;;  %s1881_s3 = smov 8  }
 0x40e   : > { %1532 = dma.vmem_to_hbm [thread:$0]  (%p2317_p13), %s1230_s23, 1024, %s2422_s25, [#allocation7], %s1880_s11, %s1880_s11, %s1881_s3  }
 0x40f   : > { %1837 = dma.done.wait (%p2317_p13), [#allocation7], 1024  }
 0x410   : > { %1839 = vsyncadd (%p2317_p13), [#allocation7], 4294966272 }
 0x411 PF: > { %s2423_s0 = sld [smem:[#allocation21_spill]]  ;;  %s2424_s16 = sld [smem:[#allocation20_spill]] }
 0x412   : > { %s2425_s18 = sld [smem:[#allocation22_spill]]  ;;  %s2426_s24 = sld [smem:[#allocation23_spill]] }
 0x413   : > { %s2427_s13 = smov %s1846_s14  ;;  %s2428_s14 = smov %s1850_s15 }
 0x414   : > { %s2429_s15 = smov %s2089_s1  ;;  %s2430_s17 = smov %s1866_s19 }
 0x417   : > { %s29_s20 = sadd.s32 1, %s2423_s0  }
 0x418   : > { %p26_p8 = scmp.ge.s32.totalorder %s29_s20, 6   ;;  %s2431_s19 = smov %s2426_s24 }
 0x41a   :  { %28 = sbr.rel (!%p26_p8) target bundleno = 17 (0x11), region = 148 }
 0x421   :  { %1245 = vsyncpa [#allocation6], 1 }
 0x422   :  { %1247 = vsyncpa [#allocation6 + $0x1], 1 }
 0x423   :  { %1248 = vsyncpa [#allocation13], 1 }
 0x424   :  { %1250 = vsyncpa [#allocation13 + $0x1], 1 }
 0x425   :  { %1251 = vsyncpa [#allocation7], 1 }
 0x426   :  { %1253 = vsyncpa [#allocation7 + $0x1], 1 }
 0x427   :  { %1254 = vsyncpa [#allocation8], 1 }
 0x428   :  { %1256 = vsyncpa [#allocation8 + $0x1], 1 }
 0x429   :  { %1257 = vsyncpa [#allocation10], 1 }

</bundles_post_ra>
